<compile_context>
chip_gen: v7x
topology: tpu7x:2x2x1
jax: 0.10.0
libtpu: 0.0.40
codegen_flags: <defaults>
</compile_context>

<pallas_src>
import functools
import math

import jax
import jax.numpy as jnp
from jax.experimental import pallas as pl
from jax.experimental.pallas import tpu as pltpu


# ---------------------------------------------------------------------------
# In-kernel building blocks
# ---------------------------------------------------------------------------
def _layer_norm(x, gamma, beta, eps=1e-5):
    mu = jnp.mean(x, axis=-1, keepdims=True)
    var = jnp.mean((x - mu) ** 2, axis=-1, keepdims=True)
    return (x - mu) * jax.lax.rsqrt(var + eps) * gamma + beta


def _bf16(x):
    return x.astype(jnp.bfloat16)


def _encoder_layer(x, wqkv_h, bqkv_h, wo_h, bo, g1, be1, w1, b1, w2, b2, g2, be2,
                   *, num_heads):
    """One post-LN transformer encoder layer on an (S, D) activation slab.

    wqkv_h : (H, D, 3*dh)  fused, head-split Q|K|V projection weights
    bqkv_h : (H, 1, 3*dh)  fused, head-split Q|K|V biases
    wo_h   : (H, dh, D)    head-split attention output projection
    """
    S, D = x.shape
    dh = D // num_heads
    scale = 1.0 / math.sqrt(dh)

    # Head-batched fused QKV projection: one batched MXU sequence instead of a
    # Python per-head loop with lane slices + concatenate.
    xb = _bf16(jnp.broadcast_to(x, (num_heads, S, D)))                  # (H,S,D)
    qkv = jax.lax.dot_general(
        xb, _bf16(wqkv_h),
        dimension_numbers=(((2,), (1,)), ((0,), (0,))),
        preferred_element_type=jnp.float32) + bqkv_h                    # (H,S,3dh)
    q = qkv[:, :, 0 * dh:1 * dh]
    k = qkv[:, :, 1 * dh:2 * dh]
    v = qkv[:, :, 2 * dh:3 * dh]

    scores = jnp.einsum('hqe,hke->hqk', _bf16(q), _bf16(k),
                        preferred_element_type=jnp.float32) * scale     # (H,S,S)
    scores = scores - jnp.max(scores, axis=-1, keepdims=True)
    p = jnp.exp(scores)
    p = p * pl.reciprocal(jnp.sum(p, axis=-1, keepdims=True), approx=True)
    ctx = jnp.einsum('hqk,hke->hqe', _bf16(p), _bf16(v),
                     preferred_element_type=jnp.float32)                # (H,S,dh)

    # Output projection summed over heads:
    #   concat_h(ctx_h) @ Wo == sum_h ctx_h @ Wo[h*dh:(h+1)*dh, :]
    attn = jnp.einsum('hqe,hed->hqd', _bf16(ctx), _bf16(wo_h),
                      preferred_element_type=jnp.float32)               # (H,S,D)
    attn = jnp.sum(attn, axis=0) + bo                                   # (S,D)

    h1 = _layer_norm(x + attn, g1, be1)

    f = jnp.dot(_bf16(h1), _bf16(w1), preferred_element_type=jnp.float32) + b1
    f = jnp.maximum(f, 0.0)
    f = jnp.dot(_bf16(f), _bf16(w2), preferred_element_type=jnp.float32) + b2

    return _layer_norm(h1 + f, g2, be2)


_WEIGHTS_PER_LAYER = 12
_NUM_LAYERS = 2


# ---------------------------------------------------------------------------
# Single fused kernel: posenc+mask -> layer1+mask -> layer2+mask -> linear+mask
# Grid iterates over batch ("parallel" => both TCs on v7x).
# ---------------------------------------------------------------------------
def fused_encoder_kernel(len_ref, x_ref, pe_ref, *refs, num_heads):
    """len_ref : (B,) int32 in SMEM (scalar-prefetched lengths)
       x_ref   : (1, S, D) embedded tokens for this batch element
       pe_ref  : (S, D) sinusoidal positional-encoding table
       refs    : 2*12 per-layer weights + final (D,D)/(1,D) linear + output ref
    """
    o_ref = refs[-1]
    w = refs[:-1]
    b = pl.program_id(0)
    S, D = pe_ref.shape

    # Build the length mask in-kernel (no lane-sparse (B,S,1) HBM input).
    valid = (jax.lax.broadcasted_iota(jnp.int32, (S, 1), 0) < len_ref[b])
    valid = valid.astype(jnp.float32)                                   # (S,1)

    h = (x_ref[0] + pe_ref[...]) * valid                                # posenc + mask

    for l in range(_NUM_LAYERS):
        lw = [r[...] for r in w[l * _WEIGHTS_PER_LAYER:(l + 1) * _WEIGHTS_PER_LAYER]]
        h = _encoder_layer(h, *lw, num_heads=num_heads)
        h = h * valid                                                   # apply_mask

    w_out, b_out = w[-2][...], w[-1][...]
    y = jnp.dot(_bf16(h), _bf16(w_out), preferred_element_type=jnp.float32) + b_out
    o_ref[0] = (y * valid).astype(o_ref.dtype)                          # final mask


# ---------------------------------------------------------------------------
# Host-side wrapper
# ---------------------------------------------------------------------------
def _const_index_map(ndim):
    def idx(b, lens):
        return (0,) * ndim
    return idx


def _pack_layer(p, num_heads):
    """Repack per-layer params into head-split, QKV-fused shapes (plain JAX)."""
    D = p["wq"].shape[0]
    dh = D // num_heads

    def split_w(wmat):   # (D, D) -> (H, D, dh):  wq_h[h] = W[:, h*dh:(h+1)*dh]
        return wmat.reshape(D, num_heads, dh).transpose(1, 0, 2)

    def split_b(bvec):   # (1, D) -> (H, 1, dh)
        return bvec.reshape(1, num_heads, dh).transpose(1, 0, 2)

    wqkv = jnp.concatenate([split_w(p["wq"]), split_w(p["wk"]), split_w(p["wv"])],
                           axis=-1)                                     # (H, D, 3dh)
    bqkv = jnp.concatenate([split_b(p["bq"]), split_b(p["bk"]), split_b(p["bv"])],
                           axis=-1)                                     # (H, 1, 3dh)
    wo_h = p["wo"].reshape(num_heads, dh, D)                            # (H, dh, D)
    return [wqkv, bqkv, wo_h, p["bo"], p["g1"], p["be1"],
            p["w1"], p["b1"], p["w2"], p["b2"], p["g2"], p["be2"]]


def sinusoidal_pos_encoding(S, D):
    pos = jnp.arange(S, dtype=jnp.float32)[:, None]
    i = jnp.arange(0, D, 2, dtype=jnp.float32)[None, :]
    angle = pos / jnp.power(10000.0, i / D)
    pe = jnp.zeros((S, D), jnp.float32)
    pe = pe.at[:, 0::2].set(jnp.sin(angle))
    pe = pe.at[:, 1::2].set(jnp.cos(angle))
    return pe


def encoder_forward(token_ids, len_list, params, *, num_heads):
    B, S = token_ids.shape
    D = params["embedding"].shape[1]

    # TODO(synk): the embedding row gather is data-dependent, so it stays in
    # plain JAX (XLA gather); only its (B,S,D) result feeds the fused kernel.
    emb = jnp.take(params["embedding"], token_ids, axis=0)              # (B,S,D)
    pe = sinusoidal_pos_encoding(S, D)                                  # (S,D)

    weights = (_pack_layer(params["layer1"], num_heads)
               + _pack_layer(params["layer2"], num_heads)
               + [params["w_out"], params["b_out"]])

    in_specs = [
        pl.BlockSpec((1, S, D), lambda b, lens: (b, 0, 0)),             # embedded tokens
        pl.BlockSpec((S, D), lambda b, lens: (0, 0)),                   # posenc table
    ]
    in_specs += [pl.BlockSpec(wt.shape, _const_index_map(wt.ndim)) for wt in weights]

    grid_spec = pltpu.PrefetchScalarGridSpec(
        num_scalar_prefetch=1,                                          # len_list -> SMEM
        grid=(B,),
        in_specs=in_specs,
        out_specs=pl.BlockSpec((1, S, D), lambda b, lens: (b, 0, 0)),
    )

    return pl.pallas_call(
        functools.partial(fused_encoder_kernel, num_heads=num_heads),
        grid_spec=grid_spec,
        out_shape=jax.ShapeDtypeStruct((B, S, D), jnp.float32),
        compiler_params=pltpu.CompilerParams(
            dimension_semantics=("parallel",)),                         # batch -> both TCs (v7x)
    )(len_list.astype(jnp.int32), emb, pe, *weights)


# ---------------------------------------------------------------------------
# Parameter init (deterministic, synthetic)
# ---------------------------------------------------------------------------
def _init_encoder_layer_params(key, D, F):
    ks = jax.random.split(key, 6)
    s = 0.02
    return {
        "wq": s * jax.random.normal(ks[0], (D, D), jnp.float32),
        "bq": jnp.zeros((1, D), jnp.float32),
        "wk": s * jax.random.normal(ks[1], (D, D), jnp.float32),
        "bk": jnp.zeros((1, D), jnp.float32),
        "wv": s * jax.random.normal(ks[2], (D, D), jnp.float32),
        "bv": jnp.zeros((1, D), jnp.float32),
        "wo": s * jax.random.normal(ks[3], (D, D), jnp.float32),
        "bo": jnp.zeros((1, D), jnp.float32),
        "g1": jnp.ones((1, D), jnp.float32),
        "be1": jnp.zeros((1, D), jnp.float32),
        "w1": s * jax.random.normal(ks[4], (D, F), jnp.float32),
        "b1": jnp.zeros((1, F), jnp.float32),
        "w2": s * jax.random.normal(ks[5], (F, D), jnp.float32),
        "b2": jnp.zeros((1, D), jnp.float32),
        "g2": jnp.ones((1, D), jnp.float32),
        "be2": jnp.zeros((1, D), jnp.float32),
    }


def init_params(key, model_dim, vocab_size):
    F = 4 * model_dim  # assumed FFN width
    k_emb, k_l1, k_l2, k_out = jax.random.split(key, 4)
    return {
        "embedding": 0.02 * jax.random.normal(k_emb, (vocab_size, model_dim), jnp.float32),
        "layer1": _init_encoder_layer_params(k_l1, model_dim, F),
        "layer2": _init_encoder_layer_params(k_l2, model_dim, F),
        "w_out": 0.02 * jax.random.normal(k_out, (model_dim, model_dim), jnp.float32),
        "b_out": jnp.zeros((1, model_dim), jnp.float32),
    }


if __name__ == "__main__":
    model_dim, num_heads, dropout, vocab_size = 32, 4, 0.1, 50
    B, S = 2, 8

    key = jax.random.PRNGKey(0)
    k_tok, k_params = jax.random.split(key)
    token_ids = jax.random.randint(k_tok, (B, S), 0, vocab_size, dtype=jnp.int32)
    len_list = jnp.array([8, 5], dtype=jnp.int32)
    params = init_params(k_params, model_dim, vocab_size)

    fwd = jax.jit(functools.partial(encoder_forward, num_heads=num_heads))
    out = fwd(token_ids, len_list, params)
    jax.block_until_ready(out)
    assert out.shape == (B, S, model_dim)
    print("KERNEL_OK")
</pallas_src>

<mosaic_0001>
module attributes {stable_mosaic.version = 11 : i64} {
  func.func @fused_encoder_kernel(%arg0: i32, %arg1: memref<2xi32, #tpu.memory_space<smem>>, %arg2: memref<1x8x32xf32, #tpu.memory_space<vmem>>, %arg3: memref<8x32xf32, #tpu.memory_space<vmem>>, %arg4: memref<4x32x24xf32, #tpu.memory_space<vmem>>, %arg5: memref<4x1x24xf32, #tpu.memory_space<vmem>>, %arg6: memref<4x8x32xf32, #tpu.memory_space<vmem>>, %arg7: memref<1x32xf32, #tpu.memory_space<vmem>>, %arg8: memref<1x32xf32, #tpu.memory_space<vmem>>, %arg9: memref<1x32xf32, #tpu.memory_space<vmem>>, %arg10: memref<32x128xf32, #tpu.memory_space<vmem>>, %arg11: memref<1x128xf32, #tpu.memory_space<vmem>>, %arg12: memref<128x32xf32, #tpu.memory_space<vmem>>, %arg13: memref<1x32xf32, #tpu.memory_space<vmem>>, %arg14: memref<1x32xf32, #tpu.memory_space<vmem>>, %arg15: memref<1x32xf32, #tpu.memory_space<vmem>>, %arg16: memref<4x32x24xf32, #tpu.memory_space<vmem>>, %arg17: memref<4x1x24xf32, #tpu.memory_space<vmem>>, %arg18: memref<4x8x32xf32, #tpu.memory_space<vmem>>, %arg19: memref<1x32xf32, #tpu.memory_space<vmem>>, %arg20: memref<1x32xf32, #tpu.memory_space<vmem>>, %arg21: memref<1x32xf32, #tpu.memory_space<vmem>>, %arg22: memref<32x128xf32, #tpu.memory_space<vmem>>, %arg23: memref<1x128xf32, #tpu.memory_space<vmem>>, %arg24: memref<128x32xf32, #tpu.memory_space<vmem>>, %arg25: memref<1x32xf32, #tpu.memory_space<vmem>>, %arg26: memref<1x32xf32, #tpu.memory_space<vmem>>, %arg27: memref<1x32xf32, #tpu.memory_space<vmem>>, %arg28: memref<32x32xf32, #tpu.memory_space<vmem>>, %arg29: memref<1x32xf32, #tpu.memory_space<vmem>>, %arg30: memref<1x8x32xf32, #tpu.memory_space<vmem>>) attributes {dimension_semantics = [#tpu.dimension_semantics<parallel>], iteration_bounds = array<i64: 2>, scalar_prefetch = 1 : i64, scratch_operands = 0 : i64, tpu.core_type = #tpu.core_type<tc>, window_params = [{transform_indices = @transform_0, window_bounds = array<i64: 1, 8, 32>}, {pipeline_mode = #tpu.pipeline_mode<synchronous>, transform_indices = @transform_1, window_bounds = array<i64: 8, 32>}, {pipeline_mode = #tpu.pipeline_mode<synchronous>, transform_indices = @transform_2, window_bounds = array<i64: 4, 32, 24>}, {pipeline_mode = #tpu.pipeline_mode<synchronous>, transform_indices = @transform_3, window_bounds = array<i64: 4, 1, 24>}, {pipeline_mode = #tpu.pipeline_mode<synchronous>, transform_indices = @transform_4, window_bounds = array<i64: 4, 8, 32>}, {pipeline_mode = #tpu.pipeline_mode<synchronous>, transform_indices = @transform_5, window_bounds = array<i64: 1, 32>}, {pipeline_mode = #tpu.pipeline_mode<synchronous>, transform_indices = @transform_6, window_bounds = array<i64: 1, 32>}, {pipeline_mode = #tpu.pipeline_mode<synchronous>, transform_indices = @transform_7, window_bounds = array<i64: 1, 32>}, {pipeline_mode = #tpu.pipeline_mode<synchronous>, transform_indices = @transform_8, window_bounds = array<i64: 32, 128>}, {pipeline_mode = #tpu.pipeline_mode<synchronous>, transform_indices = @transform_9, window_bounds = array<i64: 1, 128>}, {pipeline_mode = #tpu.pipeline_mode<synchronous>, transform_indices = @transform_10, window_bounds = array<i64: 128, 32>}, {pipeline_mode = #tpu.pipeline_mode<synchronous>, transform_indices = @transform_11, window_bounds = array<i64: 1, 32>}, {pipeline_mode = #tpu.pipeline_mode<synchronous>, transform_indices = @transform_12, window_bounds = array<i64: 1, 32>}, {pipeline_mode = #tpu.pipeline_mode<synchronous>, transform_indices = @transform_13, window_bounds = array<i64: 1, 32>}, {pipeline_mode = #tpu.pipeline_mode<synchronous>, transform_indices = @transform_14, window_bounds = array<i64: 4, 32, 24>}, {pipeline_mode = #tpu.pipeline_mode<synchronous>, transform_indices = @transform_15, window_bounds = array<i64: 4, 1, 24>}, {pipeline_mode = #tpu.pipeline_mode<synchronous>, transform_indices = @transform_16, window_bounds = array<i64: 4, 8, 32>}, {pipeline_mode = #tpu.pipeline_mode<synchronous>, transform_indices = @transform_17, window_bounds = array<i64: 1, 32>}, {pipeline_mode = #tpu.pipeline_mode<synchronous>, transform_indices = @transform_18, window_bounds = array<i64: 1, 32>}, {pipeline_mode = #tpu.pipeline_mode<synchronous>, transform_indices = @transform_19, window_bounds = array<i64: 1, 32>}, {pipeline_mode = #tpu.pipeline_mode<synchronous>, transform_indices = @transform_20, window_bounds = array<i64: 32, 128>}, {pipeline_mode = #tpu.pipeline_mode<synchronous>, transform_indices = @transform_21, window_bounds = array<i64: 1, 128>}, {pipeline_mode = #tpu.pipeline_mode<synchronous>, transform_indices = @transform_22, window_bounds = array<i64: 128, 32>}, {pipeline_mode = #tpu.pipeline_mode<synchronous>, transform_indices = @transform_23, window_bounds = array<i64: 1, 32>}, {pipeline_mode = #tpu.pipeline_mode<synchronous>, transform_indices = @transform_24, window_bounds = array<i64: 1, 32>}, {pipeline_mode = #tpu.pipeline_mode<synchronous>, transform_indices = @transform_25, window_bounds = array<i64: 1, 32>}, {pipeline_mode = #tpu.pipeline_mode<synchronous>, transform_indices = @transform_26, window_bounds = array<i64: 32, 32>}, {pipeline_mode = #tpu.pipeline_mode<synchronous>, transform_indices = @transform_27, window_bounds = array<i64: 1, 32>}, {transform_indices = @transform_28, window_bounds = array<i64: 1, 8, 32>}]} {
    %0 = tpu.iota {dimensions = array<i32: 0>} : vector<8x1xi32>
    %1 = arith.index_cast %arg0 : i32 to index
    %2 = memref.load %arg1[%1] : memref<2xi32, #tpu.memory_space<smem>>
    %3 = vector.broadcast %2 : i32 to vector<8x1xi32>
    %4 = arith.cmpi slt, %0, %3 : vector<8x1xi32>
    %5 = arith.extui %4 : vector<8x1xi1> to vector<8x1xi32>
    %6 = arith.sitofp %5 : vector<8x1xi32> to vector<8x1xf32>
    %c0 = arith.constant 0 : index
    %c0_0 = arith.constant 0 : index
    %c0_1 = arith.constant 0 : index
    %7 = vector.load %arg2[%c0, %c0_0, %c0_1] : memref<1x8x32xf32, #tpu.memory_space<vmem>>, vector<1x8x32xf32>
    %8 = vector.shape_cast %7 : vector<1x8x32xf32> to vector<8x32xf32>
    %c0_2 = arith.constant 0 : index
    %c0_3 = arith.constant 0 : index
    %9 = vector.load %arg3[%c0_2, %c0_3] : memref<8x32xf32, #tpu.memory_space<vmem>>, vector<8x32xf32>
    %10 = arith.addf %8, %9 : vector<8x32xf32>
    %11 = vector.broadcast %6 : vector<8x1xf32> to vector<8x32xf32>
    %12 = arith.mulf %10, %11 : vector<8x32xf32>
    %c0_4 = arith.constant 0 : index
    %c0_5 = arith.constant 0 : index
    %c0_6 = arith.constant 0 : index
    %13 = vector.load %arg4[%c0_4, %c0_5, %c0_6] : memref<4x32x24xf32, #tpu.memory_space<vmem>>, vector<4x32x24xf32>
    %c0_7 = arith.constant 0 : index
    %c0_8 = arith.constant 0 : index
    %c0_9 = arith.constant 0 : index
    %14 = vector.load %arg5[%c0_7, %c0_8, %c0_9] : memref<4x1x24xf32, #tpu.memory_space<vmem>>, vector<4x1x24xf32>
    %c0_10 = arith.constant 0 : index
    %c0_11 = arith.constant 0 : index
    %c0_12 = arith.constant 0 : index
    %15 = vector.load %arg6[%c0_10, %c0_11, %c0_12] : memref<4x8x32xf32, #tpu.memory_space<vmem>>, vector<4x8x32xf32>
    %c0_13 = arith.constant 0 : index
    %c0_14 = arith.constant 0 : index
    %16 = vector.load %arg7[%c0_13, %c0_14] : memref<1x32xf32, #tpu.memory_space<vmem>>, vector<1x32xf32>
    %c0_15 = arith.constant 0 : index
    %c0_16 = arith.constant 0 : index
    %17 = vector.load %arg8[%c0_15, %c0_16] : memref<1x32xf32, #tpu.memory_space<vmem>>, vector<1x32xf32>
    %c0_17 = arith.constant 0 : index
    %c0_18 = arith.constant 0 : index
    %18 = vector.load %arg9[%c0_17, %c0_18] : memref<1x32xf32, #tpu.memory_space<vmem>>, vector<1x32xf32>
    %c0_19 = arith.constant 0 : index
    %c0_20 = arith.constant 0 : index
    %19 = vector.load %arg10[%c0_19, %c0_20] : memref<32x128xf32, #tpu.memory_space<vmem>>, vector<32x128xf32>
    %c0_21 = arith.constant 0 : index
    %c0_22 = arith.constant 0 : index
    %20 = vector.load %arg11[%c0_21, %c0_22] : memref<1x128xf32, #tpu.memory_space<vmem>>, vector<1x128xf32>
    %c0_23 = arith.constant 0 : index
    %c0_24 = arith.constant 0 : index
    %21 = vector.load %arg12[%c0_23, %c0_24] : memref<128x32xf32, #tpu.memory_space<vmem>>, vector<128x32xf32>
    %c0_25 = arith.constant 0 : index
    %c0_26 = arith.constant 0 : index
    %22 = vector.load %arg13[%c0_25, %c0_26] : memref<1x32xf32, #tpu.memory_space<vmem>>, vector<1x32xf32>
    %c0_27 = arith.constant 0 : index
    %c0_28 = arith.constant 0 : index
    %23 = vector.load %arg14[%c0_27, %c0_28] : memref<1x32xf32, #tpu.memory_space<vmem>>, vector<1x32xf32>
    %c0_29 = arith.constant 0 : index
    %c0_30 = arith.constant 0 : index
    %24 = vector.load %arg15[%c0_29, %c0_30] : memref<1x32xf32, #tpu.memory_space<vmem>>, vector<1x32xf32>
    %25 = vector.shape_cast %12 : vector<8x32xf32> to vector<1x8x32xf32>
    %26 = vector.broadcast %25 : vector<1x8x32xf32> to vector<4x8x32xf32>
    %27 = arith.truncf %26 : vector<4x8x32xf32> to vector<4x8x32xbf16>
    %28 = arith.truncf %13 : vector<4x32x24xf32> to vector<4x32x24xbf16>
    %cst = arith.constant dense<0.000000e+00> : vector<4x8x24xf32>
    %29 = tpu.matmul %27, %28, %cst {dimension_numbers = #tpu.dot_dimension_numbers<[2], [1], [1], [2], [0, 0, 0, 1, 1, 2], [0], [0]>} : vector<4x8x32xbf16>, vector<4x32x24xbf16>, vector<4x8x24xf32> -> vector<4x8x24xf32>
    %30 = vector.broadcast %14 : vector<4x1x24xf32> to vector<4x8x24xf32>
    %31 = arith.addf %29, %30 : vector<4x8x24xf32>
    %32 = vector.extract_strided_slice %31 {offsets = [0, 0, 0], sizes = [4, 8, 8], strides = [1, 1, 1]} : vector<4x8x24xf32> to vector<4x8x8xf32>
    %33 = vector.extract_strided_slice %31 {offsets = [0, 0, 8], sizes = [4, 8, 8], strides = [1, 1, 1]} : vector<4x8x24xf32> to vector<4x8x8xf32>
    %34 = vector.extract_strided_slice %31 {offsets = [0, 0, 16], sizes = [4, 8, 8], strides = [1, 1, 1]} : vector<4x8x24xf32> to vector<4x8x8xf32>
    %35 = arith.truncf %32 : vector<4x8x8xf32> to vector<4x8x8xbf16>
    %36 = arith.truncf %33 : vector<4x8x8xf32> to vector<4x8x8xbf16>
    "tpu.trace_start"() <{level = 10 : i32, message = "hqe,hke->hqk"}> : () -> ()
    %cst_31 = arith.constant dense<0.000000e+00> : vector<4x8x8xf32>
    %37 = tpu.matmul %35, %36, %cst_31 {dimension_numbers = #tpu.dot_dimension_numbers<[2], [2], [1], [1], [0, 0, 0, 1, 1, 1], [0], [0]>} : vector<4x8x8xbf16>, vector<4x8x8xbf16>, vector<4x8x8xf32> -> vector<4x8x8xf32>
    "tpu.trace_stop"() : () -> ()
    %cst_32 = arith.constant 0.353553385 : f32
    %38 = vector.broadcast %cst_32 : f32 to vector<4x8x8xf32>
    %39 = arith.mulf %37, %38 : vector<4x8x8xf32>
    %cst_33 = arith.constant dense<0xFF800000> : vector<4x8xf32>
    %40 = vector.multi_reduction <maximumf>, %39, %cst_33 [2] : vector<4x8x8xf32> to vector<4x8xf32>
    %41 = vector.shape_cast %40 : vector<4x8xf32> to vector<4x8x1xf32>
    %42 = vector.broadcast %41 : vector<4x8x1xf32> to vector<4x8x8xf32>
    %43 = arith.subf %39, %42 : vector<4x8x8xf32>
    %44 = math.exp %43 : vector<4x8x8xf32>
    %cst_34 = arith.constant dense<0.000000e+00> : vector<4x8xf32>
    %45 = vector.multi_reduction <add>, %44, %cst_34 [2] : vector<4x8x8xf32> to vector<4x8xf32>
    %46 = vector.shape_cast %45 : vector<4x8xf32> to vector<4x8x1xf32>
    %47 = tpu.reciprocal %46 {approx = true} : vector<4x8x1xf32> -> vector<4x8x1xf32>
    %48 = vector.broadcast %47 : vector<4x8x1xf32> to vector<4x8x8xf32>
    %49 = arith.mulf %44, %48 : vector<4x8x8xf32>
    %50 = arith.truncf %49 : vector<4x8x8xf32> to vector<4x8x8xbf16>
    %51 = arith.truncf %34 : vector<4x8x8xf32> to vector<4x8x8xbf16>
    "tpu.trace_start"() <{level = 10 : i32, message = "hqk,hke->hqe"}> : () -> ()
    %cst_35 = arith.constant dense<0.000000e+00> : vector<4x8x8xf32>
    %52 = tpu.matmul %50, %51, %cst_35 {dimension_numbers = #tpu.dot_dimension_numbers<[2], [1], [1], [2], [0, 0, 0, 1, 1, 2], [0], [0]>} : vector<4x8x8xbf16>, vector<4x8x8xbf16>, vector<4x8x8xf32> -> vector<4x8x8xf32>
    "tpu.trace_stop"() : () -> ()
    %53 = arith.truncf %52 : vector<4x8x8xf32> to vector<4x8x8xbf16>
    %54 = arith.truncf %15 : vector<4x8x32xf32> to vector<4x8x32xbf16>
    "tpu.trace_start"() <{level = 10 : i32, message = "hqe,hed->hqd"}> : () -> ()
    %cst_36 = arith.constant dense<0.000000e+00> : vector<4x8x32xf32>
    %55 = tpu.matmul %53, %54, %cst_36 {dimension_numbers = #tpu.dot_dimension_numbers<[2], [1], [1], [2], [0, 0, 0, 1, 1, 2], [0], [0]>} : vector<4x8x8xbf16>, vector<4x8x32xbf16>, vector<4x8x32xf32> -> vector<4x8x32xf32>
    "tpu.trace_stop"() : () -> ()
    %cst_37 = arith.constant dense<0.000000e+00> : vector<8x32xf32>
    %56 = vector.multi_reduction <add>, %55, %cst_37 [0] : vector<4x8x32xf32> to vector<8x32xf32>
    %57 = vector.broadcast %16 : vector<1x32xf32> to vector<8x32xf32>
    %58 = arith.addf %56, %57 : vector<8x32xf32>
    %59 = arith.addf %12, %58 : vector<8x32xf32>
    %cst_38 = arith.constant dense<0.000000e+00> : vector<8xf32>
    %60 = vector.multi_reduction <add>, %59, %cst_38 [1] : vector<8x32xf32> to vector<8xf32>
    %61 = vector.shape_cast %60 : vector<8xf32> to vector<8x1xf32>
    %cst_39 = arith.constant 3.200000e+01 : f32
    %62 = vector.broadcast %cst_39 : f32 to vector<8x1xf32>
    %63 = arith.divf %61, %62 : vector<8x1xf32>
    %64 = vector.broadcast %63 : vector<8x1xf32> to vector<8x32xf32>
    %65 = arith.subf %59, %64 : vector<8x32xf32>
    %66 = arith.mulf %65, %65 : vector<8x32xf32>
    %cst_40 = arith.constant dense<0.000000e+00> : vector<8xf32>
    %67 = vector.multi_reduction <add>, %66, %cst_40 [1] : vector<8x32xf32> to vector<8xf32>
    %68 = vector.shape_cast %67 : vector<8xf32> to vector<8x1xf32>
    %cst_41 = arith.constant 3.200000e+01 : f32
    %69 = vector.broadcast %cst_41 : f32 to vector<8x1xf32>
    %70 = arith.divf %68, %69 : vector<8x1xf32>
    %71 = vector.broadcast %63 : vector<8x1xf32> to vector<8x32xf32>
    %72 = arith.subf %59, %71 : vector<8x32xf32>
    %cst_42 = arith.constant 9.99999974E-6 : f32
    %73 = vector.broadcast %cst_42 : f32 to vector<8x1xf32>
    %74 = arith.addf %70, %73 : vector<8x1xf32>
    %75 = math.rsqrt %74 : vector<8x1xf32>
    %76 = vector.broadcast %75 : vector<8x1xf32> to vector<8x32xf32>
    %77 = arith.mulf %72, %76 : vector<8x32xf32>
    %78 = vector.broadcast %17 : vector<1x32xf32> to vector<8x32xf32>
    %79 = arith.mulf %77, %78 : vector<8x32xf32>
    %80 = vector.broadcast %18 : vector<1x32xf32> to vector<8x32xf32>
    %81 = arith.addf %79, %80 : vector<8x32xf32>
    %82 = arith.truncf %81 : vector<8x32xf32> to vector<8x32xbf16>
    %83 = arith.truncf %19 : vector<32x128xf32> to vector<32x128xbf16>
    %cst_43 = arith.constant dense<0.000000e+00> : vector<8x128xf32>
    %84 = tpu.matmul %82, %83, %cst_43 {dimension_numbers = #tpu.dot_dimension_numbers<[1], [0], [0], [1], [0, 0, 1, 1], [], []>} : vector<8x32xbf16>, vector<32x128xbf16>, vector<8x128xf32> -> vector<8x128xf32>
    %85 = vector.broadcast %20 : vector<1x128xf32> to vector<8x128xf32>
    %86 = arith.addf %84, %85 : vector<8x128xf32>
    %cst_44 = arith.constant 0.000000e+00 : f32
    %87 = vector.broadcast %cst_44 : f32 to vector<8x128xf32>
    %88 = arith.maximumf %86, %87 : vector<8x128xf32>
    %89 = arith.truncf %88 : vector<8x128xf32> to vector<8x128xbf16>
    %90 = arith.truncf %21 : vector<128x32xf32> to vector<128x32xbf16>
    %cst_45 = arith.constant dense<0.000000e+00> : vector<8x32xf32>
    %91 = tpu.matmul %89, %90, %cst_45 {dimension_numbers = #tpu.dot_dimension_numbers<[1], [0], [0], [1], [0, 0, 1, 1], [], []>} : vector<8x128xbf16>, vector<128x32xbf16>, vector<8x32xf32> -> vector<8x32xf32>
    %92 = vector.broadcast %22 : vector<1x32xf32> to vector<8x32xf32>
    %93 = arith.addf %91, %92 : vector<8x32xf32>
    %94 = arith.addf %81, %93 : vector<8x32xf32>
    %cst_46 = arith.constant dense<0.000000e+00> : vector<8xf32>
    %95 = vector.multi_reduction <add>, %94, %cst_46 [1] : vector<8x32xf32> to vector<8xf32>
    %96 = vector.shape_cast %95 : vector<8xf32> to vector<8x1xf32>
    %cst_47 = arith.constant 3.200000e+01 : f32
    %97 = vector.broadcast %cst_47 : f32 to vector<8x1xf32>
    %98 = arith.divf %96, %97 : vector<8x1xf32>
    %99 = vector.broadcast %98 : vector<8x1xf32> to vector<8x32xf32>
    %100 = arith.subf %94, %99 : vector<8x32xf32>
    %101 = arith.mulf %100, %100 : vector<8x32xf32>
    %cst_48 = arith.constant dense<0.000000e+00> : vector<8xf32>
    %102 = vector.multi_reduction <add>, %101, %cst_48 [1] : vector<8x32xf32> to vector<8xf32>
    %103 = vector.shape_cast %102 : vector<8xf32> to vector<8x1xf32>
    %cst_49 = arith.constant 3.200000e+01 : f32
    %104 = vector.broadcast %cst_49 : f32 to vector<8x1xf32>
    %105 = arith.divf %103, %104 : vector<8x1xf32>
    %106 = vector.broadcast %98 : vector<8x1xf32> to vector<8x32xf32>
    %107 = arith.subf %94, %106 : vector<8x32xf32>
    %cst_50 = arith.constant 9.99999974E-6 : f32
    %108 = vector.broadcast %cst_50 : f32 to vector<8x1xf32>
    %109 = arith.addf %105, %108 : vector<8x1xf32>
    %110 = math.rsqrt %109 : vector<8x1xf32>
    %111 = vector.broadcast %110 : vector<8x1xf32> to vector<8x32xf32>
    %112 = arith.mulf %107, %111 : vector<8x32xf32>
    %113 = vector.broadcast %23 : vector<1x32xf32> to vector<8x32xf32>
    %114 = arith.mulf %112, %113 : vector<8x32xf32>
    %115 = vector.broadcast %24 : vector<1x32xf32> to vector<8x32xf32>
    %116 = arith.addf %114, %115 : vector<8x32xf32>
    %117 = vector.broadcast %6 : vector<8x1xf32> to vector<8x32xf32>
    %118 = arith.mulf %116, %117 : vector<8x32xf32>
    %c0_51 = arith.constant 0 : index
    %c0_52 = arith.constant 0 : index
    %c0_53 = arith.constant 0 : index
    %119 = vector.load %arg16[%c0_51, %c0_52, %c0_53] : memref<4x32x24xf32, #tpu.memory_space<vmem>>, vector<4x32x24xf32>
    %c0_54 = arith.constant 0 : index
    %c0_55 = arith.constant 0 : index
    %c0_56 = arith.constant 0 : index
    %120 = vector.load %arg17[%c0_54, %c0_55, %c0_56] : memref<4x1x24xf32, #tpu.memory_space<vmem>>, vector<4x1x24xf32>
    %c0_57 = arith.constant 0 : index
    %c0_58 = arith.constant 0 : index
    %c0_59 = arith.constant 0 : index
    %121 = vector.load %arg18[%c0_57, %c0_58, %c0_59] : memref<4x8x32xf32, #tpu.memory_space<vmem>>, vector<4x8x32xf32>
    %c0_60 = arith.constant 0 : index
    %c0_61 = arith.constant 0 : index
    %122 = vector.load %arg19[%c0_60, %c0_61] : memref<1x32xf32, #tpu.memory_space<vmem>>, vector<1x32xf32>
    %c0_62 = arith.constant 0 : index
    %c0_63 = arith.constant 0 : index
    %123 = vector.load %arg20[%c0_62, %c0_63] : memref<1x32xf32, #tpu.memory_space<vmem>>, vector<1x32xf32>
    %c0_64 = arith.constant 0 : index
    %c0_65 = arith.constant 0 : index
    %124 = vector.load %arg21[%c0_64, %c0_65] : memref<1x32xf32, #tpu.memory_space<vmem>>, vector<1x32xf32>
    %c0_66 = arith.constant 0 : index
    %c0_67 = arith.constant 0 : index
    %125 = vector.load %arg22[%c0_66, %c0_67] : memref<32x128xf32, #tpu.memory_space<vmem>>, vector<32x128xf32>
    %c0_68 = arith.constant 0 : index
    %c0_69 = arith.constant 0 : index
    %126 = vector.load %arg23[%c0_68, %c0_69] : memref<1x128xf32, #tpu.memory_space<vmem>>, vector<1x128xf32>
    %c0_70 = arith.constant 0 : index
    %c0_71 = arith.constant 0 : index
    %127 = vector.load %arg24[%c0_70, %c0_71] : memref<128x32xf32, #tpu.memory_space<vmem>>, vector<128x32xf32>
    %c0_72 = arith.constant 0 : index
    %c0_73 = arith.constant 0 : index
    %128 = vector.load %arg25[%c0_72, %c0_73] : memref<1x32xf32, #tpu.memory_space<vmem>>, vector<1x32xf32>
    %c0_74 = arith.constant 0 : index
    %c0_75 = arith.constant 0 : index
    %129 = vector.load %arg26[%c0_74, %c0_75] : memref<1x32xf32, #tpu.memory_space<vmem>>, vector<1x32xf32>
    %c0_76 = arith.constant 0 : index
    %c0_77 = arith.constant 0 : index
    %130 = vector.load %arg27[%c0_76, %c0_77] : memref<1x32xf32, #tpu.memory_space<vmem>>, vector<1x32xf32>
    %131 = vector.shape_cast %118 : vector<8x32xf32> to vector<1x8x32xf32>
    %132 = vector.broadcast %131 : vector<1x8x32xf32> to vector<4x8x32xf32>
    %133 = arith.truncf %132 : vector<4x8x32xf32> to vector<4x8x32xbf16>
    %134 = arith.truncf %119 : vector<4x32x24xf32> to vector<4x32x24xbf16>
    %cst_78 = arith.constant dense<0.000000e+00> : vector<4x8x24xf32>
    %135 = tpu.matmul %133, %134, %cst_78 {dimension_numbers = #tpu.dot_dimension_numbers<[2], [1], [1], [2], [0, 0, 0, 1, 1, 2], [0], [0]>} : vector<4x8x32xbf16>, vector<4x32x24xbf16>, vector<4x8x24xf32> -> vector<4x8x24xf32>
    %136 = vector.broadcast %120 : vector<4x1x24xf32> to vector<4x8x24xf32>
    %137 = arith.addf %135, %136 : vector<4x8x24xf32>
    %138 = vector.extract_strided_slice %137 {offsets = [0, 0, 0], sizes = [4, 8, 8], strides = [1, 1, 1]} : vector<4x8x24xf32> to vector<4x8x8xf32>
    %139 = vector.extract_strided_slice %137 {offsets = [0, 0, 8], sizes = [4, 8, 8], strides = [1, 1, 1]} : vector<4x8x24xf32> to vector<4x8x8xf32>
    %140 = vector.extract_strided_slice %137 {offsets = [0, 0, 16], sizes = [4, 8, 8], strides = [1, 1, 1]} : vector<4x8x24xf32> to vector<4x8x8xf32>
    %141 = arith.truncf %138 : vector<4x8x8xf32> to vector<4x8x8xbf16>
    %142 = arith.truncf %139 : vector<4x8x8xf32> to vector<4x8x8xbf16>
    "tpu.trace_start"() <{level = 10 : i32, message = "hqe,hke->hqk"}> : () -> ()
    %cst_79 = arith.constant dense<0.000000e+00> : vector<4x8x8xf32>
    %143 = tpu.matmul %141, %142, %cst_79 {dimension_numbers = #tpu.dot_dimension_numbers<[2], [2], [1], [1], [0, 0, 0, 1, 1, 1], [0], [0]>} : vector<4x8x8xbf16>, vector<4x8x8xbf16>, vector<4x8x8xf32> -> vector<4x8x8xf32>
    "tpu.trace_stop"() : () -> ()
    %cst_80 = arith.constant 0.353553385 : f32
    %144 = vector.broadcast %cst_80 : f32 to vector<4x8x8xf32>
    %145 = arith.mulf %143, %144 : vector<4x8x8xf32>
    %cst_81 = arith.constant dense<0xFF800000> : vector<4x8xf32>
    %146 = vector.multi_reduction <maximumf>, %145, %cst_81 [2] : vector<4x8x8xf32> to vector<4x8xf32>
    %147 = vector.shape_cast %146 : vector<4x8xf32> to vector<4x8x1xf32>
    %148 = vector.broadcast %147 : vector<4x8x1xf32> to vector<4x8x8xf32>
    %149 = arith.subf %145, %148 : vector<4x8x8xf32>
    %150 = math.exp %149 : vector<4x8x8xf32>
    %cst_82 = arith.constant dense<0.000000e+00> : vector<4x8xf32>
    %151 = vector.multi_reduction <add>, %150, %cst_82 [2] : vector<4x8x8xf32> to vector<4x8xf32>
    %152 = vector.shape_cast %151 : vector<4x8xf32> to vector<4x8x1xf32>
    %153 = tpu.reciprocal %152 {approx = true} : vector<4x8x1xf32> -> vector<4x8x1xf32>
    %154 = vector.broadcast %153 : vector<4x8x1xf32> to vector<4x8x8xf32>
    %155 = arith.mulf %150, %154 : vector<4x8x8xf32>
    %156 = arith.truncf %155 : vector<4x8x8xf32> to vector<4x8x8xbf16>
    %157 = arith.truncf %140 : vector<4x8x8xf32> to vector<4x8x8xbf16>
    "tpu.trace_start"() <{level = 10 : i32, message = "hqk,hke->hqe"}> : () -> ()
    %cst_83 = arith.constant dense<0.000000e+00> : vector<4x8x8xf32>
    %158 = tpu.matmul %156, %157, %cst_83 {dimension_numbers = #tpu.dot_dimension_numbers<[2], [1], [1], [2], [0, 0, 0, 1, 1, 2], [0], [0]>} : vector<4x8x8xbf16>, vector<4x8x8xbf16>, vector<4x8x8xf32> -> vector<4x8x8xf32>
    "tpu.trace_stop"() : () -> ()
    %159 = arith.truncf %158 : vector<4x8x8xf32> to vector<4x8x8xbf16>
    %160 = arith.truncf %121 : vector<4x8x32xf32> to vector<4x8x32xbf16>
    "tpu.trace_start"() <{level = 10 : i32, message = "hqe,hed->hqd"}> : () -> ()
    %cst_84 = arith.constant dense<0.000000e+00> : vector<4x8x32xf32>
    %161 = tpu.matmul %159, %160, %cst_84 {dimension_numbers = #tpu.dot_dimension_numbers<[2], [1], [1], [2], [0, 0, 0, 1, 1, 2], [0], [0]>} : vector<4x8x8xbf16>, vector<4x8x32xbf16>, vector<4x8x32xf32> -> vector<4x8x32xf32>
    "tpu.trace_stop"() : () -> ()
    %cst_85 = arith.constant dense<0.000000e+00> : vector<8x32xf32>
    %162 = vector.multi_reduction <add>, %161, %cst_85 [0] : vector<4x8x32xf32> to vector<8x32xf32>
    %163 = vector.broadcast %122 : vector<1x32xf32> to vector<8x32xf32>
    %164 = arith.addf %162, %163 : vector<8x32xf32>
    %165 = arith.addf %118, %164 : vector<8x32xf32>
    %cst_86 = arith.constant dense<0.000000e+00> : vector<8xf32>
    %166 = vector.multi_reduction <add>, %165, %cst_86 [1] : vector<8x32xf32> to vector<8xf32>
    %167 = vector.shape_cast %166 : vector<8xf32> to vector<8x1xf32>
    %cst_87 = arith.constant 3.200000e+01 : f32
    %168 = vector.broadcast %cst_87 : f32 to vector<8x1xf32>
    %169 = arith.divf %167, %168 : vector<8x1xf32>
    %170 = vector.broadcast %169 : vector<8x1xf32> to vector<8x32xf32>
    %171 = arith.subf %165, %170 : vector<8x32xf32>
    %172 = arith.mulf %171, %171 : vector<8x32xf32>
    %cst_88 = arith.constant dense<0.000000e+00> : vector<8xf32>
    %173 = vector.multi_reduction <add>, %172, %cst_88 [1] : vector<8x32xf32> to vector<8xf32>
    %174 = vector.shape_cast %173 : vector<8xf32> to vector<8x1xf32>
    %cst_89 = arith.constant 3.200000e+01 : f32
    %175 = vector.broadcast %cst_89 : f32 to vector<8x1xf32>
    %176 = arith.divf %174, %175 : vector<8x1xf32>
    %177 = vector.broadcast %169 : vector<8x1xf32> to vector<8x32xf32>
    %178 = arith.subf %165, %177 : vector<8x32xf32>
    %cst_90 = arith.constant 9.99999974E-6 : f32
    %179 = vector.broadcast %cst_90 : f32 to vector<8x1xf32>
    %180 = arith.addf %176, %179 : vector<8x1xf32>
    %181 = math.rsqrt %180 : vector<8x1xf32>
    %182 = vector.broadcast %181 : vector<8x1xf32> to vector<8x32xf32>
    %183 = arith.mulf %178, %182 : vector<8x32xf32>
    %184 = vector.broadcast %123 : vector<1x32xf32> to vector<8x32xf32>
    %185 = arith.mulf %183, %184 : vector<8x32xf32>
    %186 = vector.broadcast %124 : vector<1x32xf32> to vector<8x32xf32>
    %187 = arith.addf %185, %186 : vector<8x32xf32>
    %188 = arith.truncf %187 : vector<8x32xf32> to vector<8x32xbf16>
    %189 = arith.truncf %125 : vector<32x128xf32> to vector<32x128xbf16>
    %cst_91 = arith.constant dense<0.000000e+00> : vector<8x128xf32>
    %190 = tpu.matmul %188, %189, %cst_91 {dimension_numbers = #tpu.dot_dimension_numbers<[1], [0], [0], [1], [0, 0, 1, 1], [], []>} : vector<8x32xbf16>, vector<32x128xbf16>, vector<8x128xf32> -> vector<8x128xf32>
    %191 = vector.broadcast %126 : vector<1x128xf32> to vector<8x128xf32>
    %192 = arith.addf %190, %191 : vector<8x128xf32>
    %cst_92 = arith.constant 0.000000e+00 : f32
    %193 = vector.broadcast %cst_92 : f32 to vector<8x128xf32>
    %194 = arith.maximumf %192, %193 : vector<8x128xf32>
    %195 = arith.truncf %194 : vector<8x128xf32> to vector<8x128xbf16>
    %196 = arith.truncf %127 : vector<128x32xf32> to vector<128x32xbf16>
    %cst_93 = arith.constant dense<0.000000e+00> : vector<8x32xf32>
    %197 = tpu.matmul %195, %196, %cst_93 {dimension_numbers = #tpu.dot_dimension_numbers<[1], [0], [0], [1], [0, 0, 1, 1], [], []>} : vector<8x128xbf16>, vector<128x32xbf16>, vector<8x32xf32> -> vector<8x32xf32>
    %198 = vector.broadcast %128 : vector<1x32xf32> to vector<8x32xf32>
    %199 = arith.addf %197, %198 : vector<8x32xf32>
    %200 = arith.addf %187, %199 : vector<8x32xf32>
    %cst_94 = arith.constant dense<0.000000e+00> : vector<8xf32>
    %201 = vector.multi_reduction <add>, %200, %cst_94 [1] : vector<8x32xf32> to vector<8xf32>
    %202 = vector.shape_cast %201 : vector<8xf32> to vector<8x1xf32>
    %cst_95 = arith.constant 3.200000e+01 : f32
    %203 = vector.broadcast %cst_95 : f32 to vector<8x1xf32>
    %204 = arith.divf %202, %203 : vector<8x1xf32>
    %205 = vector.broadcast %204 : vector<8x1xf32> to vector<8x32xf32>
    %206 = arith.subf %200, %205 : vector<8x32xf32>
    %207 = arith.mulf %206, %206 : vector<8x32xf32>
    %cst_96 = arith.constant dense<0.000000e+00> : vector<8xf32>
    %208 = vector.multi_reduction <add>, %207, %cst_96 [1] : vector<8x32xf32> to vector<8xf32>
    %209 = vector.shape_cast %208 : vector<8xf32> to vector<8x1xf32>
    %cst_97 = arith.constant 3.200000e+01 : f32
    %210 = vector.broadcast %cst_97 : f32 to vector<8x1xf32>
    %211 = arith.divf %209, %210 : vector<8x1xf32>
    %212 = vector.broadcast %204 : vector<8x1xf32> to vector<8x32xf32>
    %213 = arith.subf %200, %212 : vector<8x32xf32>
    %cst_98 = arith.constant 9.99999974E-6 : f32
    %214 = vector.broadcast %cst_98 : f32 to vector<8x1xf32>
    %215 = arith.addf %211, %214 : vector<8x1xf32>
    %216 = math.rsqrt %215 : vector<8x1xf32>
    %217 = vector.broadcast %216 : vector<8x1xf32> to vector<8x32xf32>
    %218 = arith.mulf %213, %217 : vector<8x32xf32>
    %219 = vector.broadcast %129 : vector<1x32xf32> to vector<8x32xf32>
    %220 = arith.mulf %218, %219 : vector<8x32xf32>
    %221 = vector.broadcast %130 : vector<1x32xf32> to vector<8x32xf32>
    %222 = arith.addf %220, %221 : vector<8x32xf32>
    %223 = vector.broadcast %6 : vector<8x1xf32> to vector<8x32xf32>
    %224 = arith.mulf %222, %223 : vector<8x32xf32>
    %c0_99 = arith.constant 0 : index
    %c0_100 = arith.constant 0 : index
    %225 = vector.load %arg28[%c0_99, %c0_100] : memref<32x32xf32, #tpu.memory_space<vmem>>, vector<32x32xf32>
    %c0_101 = arith.constant 0 : index
    %c0_102 = arith.constant 0 : index
    %226 = vector.load %arg29[%c0_101, %c0_102] : memref<1x32xf32, #tpu.memory_space<vmem>>, vector<1x32xf32>
    %227 = arith.truncf %224 : vector<8x32xf32> to vector<8x32xbf16>
    %228 = arith.truncf %225 : vector<32x32xf32> to vector<32x32xbf16>
    %cst_103 = arith.constant dense<0.000000e+00> : vector<8x32xf32>
    %229 = tpu.matmul %227, %228, %cst_103 {dimension_numbers = #tpu.dot_dimension_numbers<[1], [0], [0], [1], [0, 0, 1, 1], [], []>} : vector<8x32xbf16>, vector<32x32xbf16>, vector<8x32xf32> -> vector<8x32xf32>
    %230 = vector.broadcast %226 : vector<1x32xf32> to vector<8x32xf32>
    %231 = arith.addf %229, %230 : vector<8x32xf32>
    %232 = vector.broadcast %6 : vector<8x1xf32> to vector<8x32xf32>
    %233 = arith.mulf %231, %232 : vector<8x32xf32>
    %c0_104 = arith.constant 0 : index
    %c0_105 = arith.constant 0 : index
    %c0_106 = arith.constant 0 : index
    %234 = vector.load %arg30[%c0_104, %c0_105, %c0_106] : memref<1x8x32xf32, #tpu.memory_space<vmem>>, vector<1x8x32xf32>
    %235 = vector.shape_cast %234 : vector<1x8x32xf32> to vector<8x32xf32>
    %236 = vector.shape_cast %233 : vector<8x32xf32> to vector<1x8x32xf32>
    tpu.vector_store %arg30[%c0_104, %c0_105, %c0_106], %236 {strides = array<i32>} : memref<1x8x32xf32, #tpu.memory_space<vmem>>, vector<1x8x32xf32>,
    return
  }
  func.func @transform_0(%arg0: i32, %arg1: memref<2xi32, #tpu.memory_space<smem>>) -> (i32, i32, i32) {
    %c0_i32 = arith.constant 0 : i32
    %c0_i32_0 = arith.constant 0 : i32
    %c0_i32_1 = arith.constant 0 : i32
    return %arg0, %c0_i32, %c0_i32_0 : i32, i32, i32
  }
  func.func @transform_1(%arg0: i32, %arg1: memref<2xi32, #tpu.memory_space<smem>>) -> (i32, i32) {
    %c0_i32 = arith.constant 0 : i32
    %c0_i32_0 = arith.constant 0 : i32
    %c0_i32_1 = arith.constant 0 : i32
    return %c0_i32, %c0_i32_0 : i32, i32
  }
  func.func @transform_2(%arg0: i32, %arg1: memref<2xi32, #tpu.memory_space<smem>>) -> (i32, i32, i32) {
    %c0_i32 = arith.constant 0 : i32
    %c0_i32_0 = arith.constant 0 : i32
    %c0_i32_1 = arith.constant 0 : i32
    %c0_i32_2 = arith.constant 0 : i32
    return %c0_i32, %c0_i32_0, %c0_i32_1 : i32, i32, i32
  }
  func.func @transform_3(%arg0: i32, %arg1: memref<2xi32, #tpu.memory_space<smem>>) -> (i32, i32, i32) {
    %c0_i32 = arith.constant 0 : i32
    %c0_i32_0 = arith.constant 0 : i32
    %c0_i32_1 = arith.constant 0 : i32
    %c0_i32_2 = arith.constant 0 : i32
    return %c0_i32, %c0_i32_0, %c0_i32_1 : i32, i32, i32
  }
  func.func @transform_4(%arg0: i32, %arg1: memref<2xi32, #tpu.memory_space<smem>>) -> (i32, i32, i32) {
    %c0_i32 = arith.constant 0 : i32
    %c0_i32_0 = arith.constant 0 : i32
    %c0_i32_1 = arith.constant 0 : i32
    %c0_i32_2 = arith.constant 0 : i32
    return %c0_i32, %c0_i32_0, %c0_i32_1 : i32, i32, i32
  }
  func.func @transform_5(%arg0: i32, %arg1: memref<2xi32, #tpu.memory_space<smem>>) -> (i32, i32) {
    %c0_i32 = arith.constant 0 : i32
    %c0_i32_0 = arith.constant 0 : i32
    %c0_i32_1 = arith.constant 0 : i32
    return %c0_i32, %c0_i32_0 : i32, i32
  }
  func.func @transform_6(%arg0: i32, %arg1: memref<2xi32, #tpu.memory_space<smem>>) -> (i32, i32) {
    %c0_i32 = arith.constant 0 : i32
    %c0_i32_0 = arith.constant 0 : i32
    %c0_i32_1 = arith.constant 0 : i32
    return %c0_i32, %c0_i32_0 : i32, i32
  }
  func.func @transform_7(%arg0: i32, %arg1: memref<2xi32, #tpu.memory_space<smem>>) -> (i32, i32) {
    %c0_i32 = arith.constant 0 : i32
    %c0_i32_0 = arith.constant 0 : i32
    %c0_i32_1 = arith.constant 0 : i32
    return %c0_i32, %c0_i32_0 : i32, i32
  }
  func.func @transform_8(%arg0: i32, %arg1: memref<2xi32, #tpu.memory_space<smem>>) -> (i32, i32) {
    %c0_i32 = arith.constant 0 : i32
    %c0_i32_0 = arith.constant 0 : i32
    %c0_i32_1 = arith.constant 0 : i32
    return %c0_i32, %c0_i32_0 : i32, i32
  }
  func.func @transform_9(%arg0: i32, %arg1: memref<2xi32, #tpu.memory_space<smem>>) -> (i32, i32) {
    %c0_i32 = arith.constant 0 : i32
    %c0_i32_0 = arith.constant 0 : i32
    %c0_i32_1 = arith.constant 0 : i32
    return %c0_i32, %c0_i32_0 : i32, i32
  }
  func.func @transform_10(%arg0: i32, %arg1: memref<2xi32, #tpu.memory_space<smem>>) -> (i32, i32) {
    %c0_i32 = arith.constant 0 : i32
    %c0_i32_0 = arith.constant 0 : i32
    %c0_i32_1 = arith.constant 0 : i32
    return %c0_i32, %c0_i32_0 : i32, i32
  }
  func.func @transform_11(%arg0: i32, %arg1: memref<2xi32, #tpu.memory_space<smem>>) -> (i32, i32) {
    %c0_i32 = arith.constant 0 : i32
    %c0_i32_0 = arith.constant 0 : i32
    %c0_i32_1 = arith.constant 0 : i32
    return %c0_i32, %c0_i32_0 : i32, i32
  }
  func.func @transform_12(%arg0: i32, %arg1: memref<2xi32, #tpu.memory_space<smem>>) -> (i32, i32) {
    %c0_i32 = arith.constant 0 : i32
    %c0_i32_0 = arith.constant 0 : i32
    %c0_i32_1 = arith.constant 0 : i32
    return %c0_i32, %c0_i32_0 : i32, i32
  }
  func.func @transform_13(%arg0: i32, %arg1: memref<2xi32, #tpu.memory_space<smem>>) -> (i32, i32) {
    %c0_i32 = arith.constant 0 : i32
    %c0_i32_0 = arith.constant 0 : i32
    %c0_i32_1 = arith.constant 0 : i32
    return %c0_i32, %c0_i32_0 : i32, i32
  }
  func.func @transform_14(%arg0: i32, %arg1: memref<2xi32, #tpu.memory_space<smem>>) -> (i32, i32, i32) {
    %c0_i32 = arith.constant 0 : i32
    %c0_i32_0 = arith.constant 0 : i32
    %c0_i32_1 = arith.constant 0 : i32
    %c0_i32_2 = arith.constant 0 : i32
    return %c0_i32, %c0_i32_0, %c0_i32_1 : i32, i32, i32
  }
  func.func @transform_15(%arg0: i32, %arg1: memref<2xi32, #tpu.memory_space<smem>>) -> (i32, i32, i32) {
    %c0_i32 = arith.constant 0 : i32
    %c0_i32_0 = arith.constant 0 : i32
    %c0_i32_1 = arith.constant 0 : i32
    %c0_i32_2 = arith.constant 0 : i32
    return %c0_i32, %c0_i32_0, %c0_i32_1 : i32, i32, i32
  }
  func.func @transform_16(%arg0: i32, %arg1: memref<2xi32, #tpu.memory_space<smem>>) -> (i32, i32, i32) {
    %c0_i32 = arith.constant 0 : i32
    %c0_i32_0 = arith.constant 0 : i32
    %c0_i32_1 = arith.constant 0 : i32
    %c0_i32_2 = arith.constant 0 : i32
    return %c0_i32, %c0_i32_0, %c0_i32_1 : i32, i32, i32
  }
  func.func @transform_17(%arg0: i32, %arg1: memref<2xi32, #tpu.memory_space<smem>>) -> (i32, i32) {
    %c0_i32 = arith.constant 0 : i32
    %c0_i32_0 = arith.constant 0 : i32
    %c0_i32_1 = arith.constant 0 : i32
    return %c0_i32, %c0_i32_0 : i32, i32
  }
  func.func @transform_18(%arg0: i32, %arg1: memref<2xi32, #tpu.memory_space<smem>>) -> (i32, i32) {
    %c0_i32 = arith.constant 0 : i32
    %c0_i32_0 = arith.constant 0 : i32
    %c0_i32_1 = arith.constant 0 : i32
    return %c0_i32, %c0_i32_0 : i32, i32
  }
  func.func @transform_19(%arg0: i32, %arg1: memref<2xi32, #tpu.memory_space<smem>>) -> (i32, i32) {
    %c0_i32 = arith.constant 0 : i32
    %c0_i32_0 = arith.constant 0 : i32
    %c0_i32_1 = arith.constant 0 : i32
    return %c0_i32, %c0_i32_0 : i32, i32
  }
  func.func @transform_20(%arg0: i32, %arg1: memref<2xi32, #tpu.memory_space<smem>>) -> (i32, i32) {
    %c0_i32 = arith.constant 0 : i32
    %c0_i32_0 = arith.constant 0 : i32
    %c0_i32_1 = arith.constant 0 : i32
    return %c0_i32, %c0_i32_0 : i32, i32
  }
  func.func @transform_21(%arg0: i32, %arg1: memref<2xi32, #tpu.memory_space<smem>>) -> (i32, i32) {
    %c0_i32 = arith.constant 0 : i32
    %c0_i32_0 = arith.constant 0 : i32
    %c0_i32_1 = arith.constant 0 : i32
    return %c0_i32, %c0_i32_0 : i32, i32
  }
  func.func @transform_22(%arg0: i32, %arg1: memref<2xi32, #tpu.memory_space<smem>>) -> (i32, i32) {
    %c0_i32 = arith.constant 0 : i32
    %c0_i32_0 = arith.constant 0 : i32
    %c0_i32_1 = arith.constant 0 : i32
    return %c0_i32, %c0_i32_0 : i32, i32
  }
  func.func @transform_23(%arg0: i32, %arg1: memref<2xi32, #tpu.memory_space<smem>>) -> (i32, i32) {
    %c0_i32 = arith.constant 0 : i32
    %c0_i32_0 = arith.constant 0 : i32
    %c0_i32_1 = arith.constant 0 : i32
    return %c0_i32, %c0_i32_0 : i32, i32
  }
  func.func @transform_24(%arg0: i32, %arg1: memref<2xi32, #tpu.memory_space<smem>>) -> (i32, i32) {
    %c0_i32 = arith.constant 0 : i32
    %c0_i32_0 = arith.constant 0 : i32
    %c0_i32_1 = arith.constant 0 : i32
    return %c0_i32, %c0_i32_0 : i32, i32
  }
  func.func @transform_25(%arg0: i32, %arg1: memref<2xi32, #tpu.memory_space<smem>>) -> (i32, i32) {
    %c0_i32 = arith.constant 0 : i32
    %c0_i32_0 = arith.constant 0 : i32
    %c0_i32_1 = arith.constant 0 : i32
    return %c0_i32, %c0_i32_0 : i32, i32
  }
  func.func @transform_26(%arg0: i32, %arg1: memref<2xi32, #tpu.memory_space<smem>>) -> (i32, i32) {
    %c0_i32 = arith.constant 0 : i32
    %c0_i32_0 = arith.constant 0 : i32
    %c0_i32_1 = arith.constant 0 : i32
    return %c0_i32, %c0_i32_0 : i32, i32
  }
  func.func @transform_27(%arg0: i32, %arg1: memref<2xi32, #tpu.memory_space<smem>>) -> (i32, i32) {
    %c0_i32 = arith.constant 0 : i32
    %c0_i32_0 = arith.constant 0 : i32
    %c0_i32_1 = arith.constant 0 : i32
    return %c0_i32, %c0_i32_0 : i32, i32
  }
  func.func @transform_28(%arg0: i32, %arg1: memref<2xi32, #tpu.memory_space<smem>>) -> (i32, i32, i32) {
    %c0_i32 = arith.constant 0 : i32
    %c0_i32_0 = arith.constant 0 : i32
    %c0_i32_1 = arith.constant 0 : i32
    return %arg0, %c0_i32, %c0_i32_0 : i32, i32, i32
  }
}

</mosaic_0001>

<bundles_post_ra>
// kernel: encoder_forward.1
= control target key start
LH: loop header
LB: loop body
LE: loop exit
PB: predicated region body
PF: predicated region fallthrough
CT: control target
= control target key end

     0   :  { %s3810_s6 = smov 1   ;;  %s3811_s10 = smov 2   ;;  %s4503_s0 = inlined_call_operand.smem [shape: u32[30], index: -1, kind: input, shape index: {}] }
   0x1   :  { %s3853_s5 = sld [smem:[%s4503_s0]]   ;;  %s3812_s14 = smov 3  }
   0x2   :  { %s3858_s9 = sld [smem:[%s4503_s0 + %s3810_s6]]   ;;  %s3813_s18 = smov 4  }
   0x3   :  { %s3863_s13 = sld [smem:[%s4503_s0 + %s3811_s10]]   ;;  %s3814_s22 = smov 5  }
   0x4   :  { %s3868_s17 = sld [smem:[%s4503_s0 + %s3812_s14]]   ;;  %s3815_s26 = smov 6  }
   0x5   :  { %s3873_s21 = sld [smem:[%s4503_s0 + %s3813_s18]]   ;;  %s3816_s30 = smov 7  }
   0x6   :  { %s3878_s25 = sld [smem:[%s4503_s0 + %s3814_s22]]   ;;  %s3817_s4 = smov 8  }
   0x7   :  { %s3883_s29 = sld [smem:[%s4503_s0 + %s3815_s26]]   ;;  %s3818_s10 = smov 9  }
   0x8   :  { %4510 = sst [smem:[#allocation8_spill]] %s3858_s9  ;;  %s3819_s15 = smov 10  }
   0x9   :  { %4511 = sst [smem:[#allocation9_spill]] %s3863_s13  ;;  %s3820_s20 = smov 11  }
   0xa   :  { %s3888_s3 = sld [smem:[%s4503_s0 + %s3816_s30]]   ;;  %s3821_s26 = smov 12  }
   0xb   :  { %s3893_s8 = sld [smem:[%s4503_s0 + %s3817_s4]]   ;;  %s3822_s1 = smov 13  }
   0xc   :  { %s3898_s14 = sld [smem:[%s4503_s0 + %s3818_s10]]   ;;  %s3823_s7 = smov 14  }
   0xd   :  { %s3903_s19 = sld [smem:[%s4503_s0 + %s3819_s15]]   ;;  %s3824_s15 = smov 15  }
   0xe   :  { %s3908_s24 = sld [smem:[%s4503_s0 + %s3820_s20]]   ;;  %s3825_s22 = smov 16  }
   0xf   :  { %s3913_s30 = sld [smem:[%s4503_s0 + %s3821_s26]]   ;;  %s3826_s28 = smov 17  }
  0x10   :  { %4512 = sst [smem:[#allocation10_spill]] %s3888_s3 }
  0x11   :  { %4513 = sst [smem:[#allocation11_spill]] %s3893_s8 }
  0x12   :  { %s3918_s6 = sld [smem:[%s4503_s0 + %s3822_s1]]  }
  0x13   :  { %s3923_s12 = sld [smem:[%s4503_s0 + %s3823_s7]]   ;;  %s3827_s7 = smov 18  }
  0x14   :  { %s3928_s20 = sld [smem:[%s4503_s0 + %s3824_s15]]   ;;  %s3828_s15 = smov 19  }
  0x15   :  { %s3933_s27 = sld [smem:[%s4503_s0 + %s3825_s22]]   ;;  %s3829_s22 = smov 20  }
  0x16   :  { %s3938_s4 = sld [smem:[%s4503_s0 + %s3826_s28]]   ;;  %s3830_s28 = smov 21  }
  0x18   :  { %4514 = sst [smem:[#allocation12_spill]] %s3918_s6 }
  0x19   :  { %4515 = sst [smem:[#allocation13_spill]] %s3923_s12 }
  0x1a   :  { %s3943_s12 = sld [smem:[%s4503_s0 + %s3827_s7]]   ;;  %s3831_s7 = smov 22  }
  0x1b   :  { %4516 = sst [smem:[#allocation14_spill]] %s3933_s27 }
  0x1c   :  { %4517 = sst [smem:[#allocation15_spill]] %s3938_s4 }
  0x1d   :  { %s3948_s6 = sld [smem:[%s4503_s0 + %s3828_s15]]   ;;  %s3832_s15 = smov 23  }
  0x1e   :  { %s3953_s27 = sld [smem:[%s4503_s0 + %s3829_s22]]   ;;  %s3833_s22 = smov 24  }
  0x1f   :  { %s3958_s4 = sld [smem:[%s4503_s0 + %s3830_s28]]   ;;  %s3834_s28 = smov 25  }
  0x20   :  { %4518 = sst [smem:[#allocation16_spill]] %s3943_s12 }
  0x21   :  { %s3963_s16 = sld [smem:[%s4503_s0 + %s3831_s7]]   ;;  %s3835_s7 = smov 26  }
  0x22   :  { %s3968_s23 = sld [smem:[%s4503_s0 + %s3832_s15]]  }
  0x23   :  { %4519 = sst [smem:[#allocation17_spill]] %s3948_s6  ;;  %s3836_s6 = smov 27  }
  0x24   :  { %4520 = sst [smem:[#allocation18_spill]] %s3953_s27  ;;  %s3837_s27 = smov 28  }
  0x25   :  { %4521 = sst [smem:[#allocation19_spill]] %s3958_s4  ;;  %s3838_s4 = smov 29  }
  0x26   :  { %s3973_s1 = sld [smem:[%s4503_s0 + %s3833_s22]]  }
  0x27   :  { %4522 = sst [smem:[#allocation20_spill]] %s3963_s16  ;;  %s64_s16 = sshll.u32 %s3853_s5, 4  ;;  %s65_s16 = int_to_ptr.vmem [resolvable:$true] %s64_s16 }
  0x28   :  { %4523 = sst [smem:[#allocation21_spill]] %s3968_s23  ;;  %p3737_p1 = scmp.lt.s32.totalorder %s65_s16, %s65_s16 }
  0x29   :  { %s3978_s10 = sld [smem:[%s4503_s0 + %s3834_s28]]  }
  0x2a   :  { %s3983_s12 = sld [smem:[%s4503_s0 + %s3835_s7]]   ;;  %s3732_s7 = scalar_lea.vmem %s65_s16, 16 }
  0x2b   :  { %s3988_s23 = sld [smem:[%s4503_s0 + %s3836_s6]]   ;;  %p3733_p0 = scmp.ne.s32.totalorder %s65_s16, %s3732_s7 }
  0x2c   :  { %4524 = sst [smem:[#allocation22_spill]] %s3973_s1  ;;  %p3738_p2 = scmp.lt.s32.totalorder %s3732_s7, %s3732_s7 }
  0x2d   :  { %s3993_s1 = sld [smem:[%s4503_s0 + %s3837_s27]]  }
  0x2e   :  { %p3739_p3 = por %p3738_p2, %p3737_p1 }
  0x2f   :  { %4525 = sst [smem:[#allocation23_spill]] %s3978_s10 }
  0x30   :  { %4526 = sst [smem:[#allocation24_spill]] %s3983_s12  ;;  %p3740_p4 = pnand %p3739_p3, %p3733_p0 }
  0x31   :  { %s3998_s10 = sld [smem:[%s4503_s0 + %s3838_s4]]  }
  0x33   :  { %4527 = sst [smem:[#allocation25_spill]] %s3993_s1 }
  0x34   :  { %3743 = shalt.err (!%p3740_p4)  }
  0x35   :  { %s3839_s11 = smov [#allocation3]  }
  0x36   :  { %67 = dma.vmem_to_smem %s65_s16, 16, %s3839_s11, [#allocation2] }
  0x37   :  { %3788 = dma.done.wait [#allocation2], 16 }
  0x38   :  { %3789 = vsyncadd [#allocation2], 4294967280 }
  0x39   :  { %69 = sfence }
  0x3a   :  { %70 = vsyncpa [#allocation5], 0 }
  0x3b   :  { %72 = vsyncpa [#allocation5 + $0x1], 0  ;;  %s4001_s6 = smov 0   ;;  %s4003_s0 = smov 0  }
  0x3c   :  { %s4005_s5 = smov 0   ;;  %s4007_s15 = smov 0  }
  0x3d LB: > { %s4022_s18 = sadd.s32 4294967295, %s3808_s15   ;;  %s3179_s27 = sadd.s32 4294967294, %s3808_s15   ;;  %s3808_s15 = sphi %s4007_s15, %s4551_s15   ;;  %s3804_s5 = sphi %s4005_s5, %s4550_s5   ;;  %s3800_s0 = sphi %s4003_s0, %s4549_s0   ;;  %s3796_s6 = sphi %s4001_s6, %s4548_s6  }
  0x3e   : > { %s4026_s22 = sadd.s32 1, %s3808_s15   ;;  %s678_s26 = sadd.s32 1, %s3804_s5 }
  0x3f   : > { %s675_s4 = ssub.s32 %s3808_s15, %s4026_s22  ;;  %p688_p5 = scmp.ne.s32.totalorder %s3804_s5, %s3800_s0 }
  0x40   : > { %p676_p6 = scmp.eq.s32.totalorder %s675_s4, 0  ;;  %p689_p7 = scmp.eq.s32.totalorder %s4022_s18, 1 }
  0x41   : > { %p694_p8 = scmp.ne.s32.totalorder %s3800_s0, %s3796_s6  ;;  %p695_p9 = scmp.eq.s32.totalorder %s3179_s27, 1 }
  0x42   : > { %s4037_s28 = scalar_select %p676_p6, %s3804_s5, %s678_s26  }
  0x43   : > { %p4039_p10 = por %p689_p7, %p688_p5  ;;  %p4043_p11 = por %p695_p9, %p694_p8 }
  0x44   : > { %p3182_p12 = scmp.ge.s32.totalorder %s3808_s15, 1  ;;  %p801_p13 = scmp.lt.s32.totalorder %s3808_s15, 3 }
  0x46   : > { %p802_p0 = pnand %p3182_p12, %p801_p13 }
  0x47   : > { %v890_v0 = vld [vmem:[%s3868_s17] sm:$0xff] (!%p802_p0)  ;;  %v891_v1 = vld [vmem:[%s3868_s17 + $0x8] sm:$0xff] (!%p802_p0)  ;;  %v892_v2 = vld [vmem:[%s3868_s17 + $0x10] sm:$0xff] (!%p802_p0)  ;;  %p874_p1 = scmp.lt.s32.totalorder (!%p802_p0), %s4022_s18, 1  ;;  %v879_v3 = vlaneseq (!%p802_p0)  ;;  %v3840_v4 = vmov (!%p802_p0), 0.0   ;;  %s4530_s13 = sld [smem:[#allocation9_spill]] (!%p802_p0) }
  0x48   : > { %805 = sbr.rel (%p802_p0) target bundleno = 5098 (0x13ea), region = 132  ;;  %3347 = vmatprep.subr.bf16.mxu1 (!%p802_p0), %v3840_v4  ;;  %v942_v5 = vpack.c.bf16 (!%p802_p0), %v891_v1, %v890_v0  ;;  %v893_v6 = vld [vmem:[%s3868_s17 + $0x18] sm:$0xff] (!%p802_p0)  ;;  %vm3841_vm0 = vmmov (!%p802_p0), 0   ;;  %s4531_s9 = sld [smem:[#allocation8_spill]] (!%p802_p0)  ;;  %3363 = vmatprep.subr.bf16.mxu0 (!%p802_p0), %v3840_v4  ;;  %v898_v7 = vld [vmem:[%s3868_s17 + $0x40] sm:$0xff] (!%p802_p0)  ;;  %v899_v8 = vld [vmem:[%s3868_s17 + $0x48] sm:$0xff] (!%p802_p0) }
  0x49   : > { %3351 = vmatprep.mubr.msk.bf16.mxu1 (!%p802_p0), %vm3841_vm0, %v3840_v4  ;;  %s881_s7 = sld [smem:[#allocation3 + %s4022_s18]] (!%p802_p0)  ;;  %3367 = vmatprep.mubr.msk.bf16.mxu0 (!%p802_p0), %vm3841_vm0, %v3840_v4  ;;  %v943_v9 = vpack.c.bf16 (!%p802_p0), %v893_v6, %v892_v2  ;;  %v946_v10 = vpack.c.bf16 (!%p802_p0), %v899_v8, %v898_v7  ;;  %v900_v11 = vld [vmem:[%s3868_s17 + $0x50] sm:$0xff] (!%p802_p0)  ;;  %v880_v12 = vshrl.u32 (!%p802_p0), %v879_v3, 7  ;;  %v901_v14 = vld [vmem:[%s3868_s17 + $0x58] sm:$0xff] (!%p802_p0)  ;;  %v894_v19 = vld [vmem:[%s3868_s17 + $0x20] sm:$0xff] (!%p802_p0)  ;;  %vm974_vm2 = vcmask (!%p802_p0), 261120  }
  0x4a   : > { %3348 = vmatpush3.bf16.msra.mxu1 (!%p802_p0), %v942_v5  ;;  %v947_v15 = vpack.c.bf16 (!%p802_p0), %v901_v14, %v900_v11  ;;  %v895_v20 = vld [vmem:[%s3868_s17 + $0x28] sm:$0xff] (!%p802_p0)  ;;  %v896_v25 = vld [vmem:[%s3868_s17 + $0x30] sm:$0xff] (!%p802_p0)  ;;  %v897_v26 = vld [vmem:[%s3868_s17 + $0x38] sm:$0xff] (!%p802_p0)  ;;  %s3842_s4 = smov (!%p802_p0), 120   ;;  %vm1145_vm3 = vcmask (!%p802_p0), 64512   ;;  %vm1396_vm4 = vcmask (!%p802_p0), 1043456  }
  0x4b   : > { %3349 = vmatprep.subr.bf16.mxu1 (!%p802_p0), %v3840_v4  ;;  %3364 = vmatpush3.bf16.msra.mxu0 (!%p802_p0), %v946_v10  ;;  %v944_v23 = vpack.c.bf16 (!%p802_p0), %v895_v20, %v894_v19  ;;  %v945_v27 = vpack.c.bf16 (!%p802_p0), %v897_v26, %v896_v25  ;;  %v902_v28 = vld [vmem:[%s3868_s17 + $0x60] sm:$0xff] (!%p802_p0)  ;;  %v903_v29 = vld [vmem:[%s3868_s17 + $0x68] sm:$0xff] (!%p802_p0)  ;;  %v904_v31 = vld [vmem:[%s3868_s17 + $0x70] sm:$0xff] (!%p802_p0)  ;;  %s4532_s3 = sld [smem:[#allocation10_spill]] (!%p802_p0)  ;;  %s4533_s8 = sld [smem:[#allocation11_spill]] (!%p802_p0) }
  0x4c   : > { %3365 = vmatprep.subr.bf16.mxu0 (!%p802_p0), %v3840_v4  ;;  %v948_v30 = vpack.c.bf16 (!%p802_p0), %v903_v29, %v902_v28  ;;  %v905_v32 = vld [vmem:[%s3868_s17 + $0x78] sm:$0xff] (!%p802_p0)  ;;  %v3186_v34 = vld [vmem:[%s3873_s21] ss:$0 sm:$0xff] (!%p802_p0)  ;;  %v3188_v35 = vld [vmem:[%s3873_s21 + $0x2] ss:$0 sm:$0xff] (!%p802_p0)  ;;  %s4546_s12 = sld [smem:[#allocation24_spill]] (!%p802_p0) }
  0x4d   : > { %v887_v13 = vld [vmem:[%s4530_s13] sm:$0xff] (!%p802_p0)  ;;  %v949_v33 = vpack.c.bf16 (!%p802_p0), %v905_v32, %v904_v31  ;;  %s4547_s1 = sld [smem:[#allocation25_spill]] (!%p802_p0) }
  0x4e   : > { %3350 = vmatpush3.bf16.msra.mxu1 (!%p802_p0), %v943_v9  ;;  %v3187_v48 = vld [vmem:[%s3873_s21 + $0x1] ss:$0 sm:$0xff] (!%p802_p0)  ;;  %v3189_v55 = vld [vmem:[%s3873_s21 + $0x3] ss:$0 sm:$0xff] (!%p802_p0) }
  0x4f   : > { %s875_s11 = scalar_select %p874_p1, %s4022_s18, 1  ;;  %v882_v17 = vstv %s881_s7  ;;  %3355 = vmatprep.subr.bf16.mxu1 %v3840_v4  ;;  %3366 = vmatpush3.bf16.msra.mxu0 %v947_v15 }
  0x50   : > { %vm883_vm1 = vcmp.lt.s32.totalorder %v880_v12, %v882_v17  ;;  %3379 = vmatprep.subr.bf16.mxu0 %v3840_v4  ;;  %s3843_s7 = smov 112  }
  0x51   : > { %s3184_s27 = sshll.u32 %s875_s11, 3  ;;  %v4074_v21 = vsel %vm883_vm1, 1.0, %v3840_v4  ;;  %s4534_s11 = sld [smem:[#allocation12_spill]] }
  0x52   : > { %s877_s26 = scalar_lea.vmem %s4531_s9, %s3184_s27  ;;  %s4535_s27 = sld [smem:[#allocation13_spill]] }
  0x53   : > { %v886_v16 = vld [vmem:[%s877_s26] sm:$0xff]  ;;  %s4536_s26 = sld [smem:[#allocation14_spill]] }
  0x54   : > { %v888_v18 = vadd.f32 %v887_v13, %v886_v16 }
  0x56   : > { %v4077_v22 = vmul.f32 %v4074_v21, %v888_v18 }
  0x58   : > { %v941_v24 = vpack.c.bf16 %v4077_v22, %v4077_v22 }
  0x5a   : > { %3352 = vmatmul.mubr.msk.bf16.vlgmr.msra.gmra.mrb[0].mxu1 %vm974_vm2, %v941_v24  ;;  %3368 = vmatmul.mubr.msk.bf16.vlgmr.msra.gmra.mrb[0].mxu0 %vm974_vm2, %v941_v24 }
  0x5b   : > { %3356 = vmatpush3.bf16.msra.mxu1 %v944_v23  ;;  %3359 = vmatprep.mubr.msk.bf16.mxu1 %vm3841_vm0, %v3840_v4 }
  0x5c   : > { %3357 = vmatprep.subr.bf16.mxu1 %v3840_v4  ;;  %3381 = vmatprep.mubr.msk.bf16.mxu0 %vm3841_vm0, %v3840_v4 }
  0x5f   : > { %3358 = vmatpush3.bf16.msra.mxu1 %v945_v27 }
  0x60   : > { %3371 = vmatprep.subr.bf16.mxu1 %v3840_v4 }
  0x62   : > { %3360 = vmatmul.mubr.msk.bf16.vlgmr.msra.gmra.mrb[4].mxu1 %vm974_vm2, %v941_v24 }
  0x63   : > { %3372 = vmatpush3.bf16.msra.mxu1 %v948_v30  ;;  %3375 = vmatprep.mubr.msk.bf16.mxu1 %vm3841_vm0, %v3840_v4 }
  0x64   : > { %3373 = vmatprep.subr.bf16.mxu1 %v3840_v4 }
  0x67   : > { %3374 = vmatpush3.bf16.msra.mxu1 %v949_v33 }
  0x68   : > { %3385 = vmatprep.subr.bf16.mxu1 %v3840_v4 }
  0x6a   : > { %3376 = vmatmul.mubr.msk.bf16.vlgmr.msra.gmra.mrb[8].mxu1 %vm974_vm2, %v941_v24 }
  0x6b   : > { %3387 = vmatprep.mubr.msk.bf16.mxu1 %vm3841_vm0, %v3840_v4 }
 0x12d   : > { %v1012_v36 = vpop.f32.mrb[0].mxu1  ;;  %v1092_v37 = vpop.f32.mrb[0].mxu0 }
 0x12e   : > { %v1013_v38 = vadd.f32 %v3186_v34, %v1012_v36  ;;  %v3353_v39 = vpop.f32.mrb[1].mxu1  ;;  %v1093_v40 = vadd.f32 %v3188_v35, %v1092_v37  ;;  %v3369_v41 = vpop.f32.mrb[1].mxu0 }
 0x12f   : > { %v1015_v42 = vpop.f32.mrb[2].mxu1  ;;  %v1095_v43 = vpop.f32.mrb[2].mxu0 }
 0x130   : > { %v4106_v44 = vpack.c.bf16 %v1013_v38, %v1013_v38  ;;  %v3354_v45 = vpop.f32.mrb[3].mxu1  ;;  %v4108_v46 = vpack.c.bf16 %v1093_v40, %v1093_v40  ;;  %v3370_v47 = vpop.f32.mrb[3].mxu0 }
 0x132   : > { %1143 = vrot.lane.b32.xlu0 %v4106_v44, %s3842_s4  ;;  %1242 = vrot.lane.b32.xlu1 %v4108_v46, %s3842_s4 }
 0x135   : > { %v1052_v49 = vpop.f32.mrb[4].mxu1 }
 0x136   : > { %v1053_v50 = vadd.f32 %v3187_v48, %v1052_v49  ;;  %v3361_v51 = vpop.f32.mrb[5].mxu1 }
 0x137   : > { %v1055_v52 = vpop.f32.mrb[6].mxu1 }
 0x138   : > { %v4115_v53 = vpack.c.bf16 %v1053_v50, %v1053_v50  ;;  %v3362_v54 = vpop.f32.mrb[7].mxu1 }
 0x13a   : > { %1193 = vrot.lane.b32.xlu0 %v4115_v53, %s3842_s4 }
 0x13d   : > { %v1132_v56 = vpop.f32.mrb[8].mxu1 }
 0x13e   : > { %v1133_v57 = vadd.f32 %v3189_v55, %v1132_v56  ;;  %v3377_v58 = vpop.f32.mrb[9].mxu1 }
 0x13f   : > { %v1135_v59 = vpop.f32.mrb[10].mxu1 }
 0x140   : > { %v4120_v60 = vpack.c.bf16 %v1133_v57, %v1133_v57  ;;  %v3378_v61 = vpop.f32.mrb[11].mxu1 }
 0x142   : > { %1291 = vrot.lane.b32.xlu1 %v4120_v60, %s3842_s4 }
 0x1a4   : > { %v1144_v62 = vpop.permute.xlu0 %1143  ;;  %v1243_v0 = vpop.permute.xlu1 %1242 }
 0x1a5   : > { %v1150_v63 = vsel %vm1145_vm3, %v1144_v62, 0  ;;  %v1248_v1 = vsel %vm1145_vm3, %v1243_v0, 0 }
 0x1a6   : > { %3380 = vmatpush3.bf16.xpose.msra.mxu0 %v1150_v63 }
 0x1a7   : > { %3391 = vmatprep.subr.bf16.mxu0 %v3840_v4 }
 0x1ac   : > { %v1194_v2 = vpop.permute.xlu0 %1193 }
 0x1ad   : > { %v1199_v3 = vsel %vm1145_vm3, %v1194_v2, 0  ;;  %3382 = vmatmul.mubr.msk.bf16.vlgmr.msra.gmra.mrb[4].mxu0 %vm1145_vm3, %v4106_v44 }
 0x1ae   : > { %3386 = vmatpush3.bf16.xpose.msra.mxu1 %v1199_v3  ;;  %3392 = vmatpush3.bf16.xpose.msra.mxu0 %v1248_v1 }
 0x1af   : > { %3393 = vmatprep.mubr.msk.bf16.mxu0 %vm3841_vm0, %v3840_v4  ;;  %3397 = vmatprep.subr.bf16.mxu1 %v3840_v4 }
 0x1b0   : > { %3403 = vmatprep.subr.bf16.mxu0 %v3840_v4 }
 0x1b4   : > { %v1292_v5 = vpop.permute.xlu1 %1291 }
 0x1b5   : > { %v1297_v6 = vsel %vm1145_vm3, %v1292_v5, 0  ;;  %3388 = vmatmul.mubr.msk.bf16.vlgmr.msra.gmra.mrb[12].mxu1 %vm1145_vm3, %v4115_v53  ;;  %3394 = vmatmul.mubr.msk.bf16.vlgmr.msra.gmra.mrb[8].mxu0 %vm1145_vm3, %v4108_v46 }
 0x1b6   : > { %3398 = vmatpush3.bf16.xpose.msra.mxu1 %v1297_v6  ;;  %3399 = vmatprep.mubr.msk.bf16.mxu1 %vm3841_vm0, %v3840_v4 }
 0x1b7   : > { %3405 = vmatprep.mubr.msk.bf16.mxu0 %vm3841_vm0, %v3840_v4  ;;  %3409 = vmatprep.subr.bf16.mxu1 %v3840_v4 }
 0x1bd   : > { %3400 = vmatmul.mubr.msk.bf16.vlgmr.msra.gmra.mrb[16].mxu1 %vm1145_vm3, %v4120_v60 }
 0x1be   : > { %3411 = vmatprep.mubr.msk.bf16.mxu1 %vm3841_vm0, %v3840_v4 }
 0x280   : > { %v1186_v7 = vpop.f32.mrb[4].mxu0 }
 0x281   : > { %v1339_v8 = vmul.f32 0.35355338, %v1186_v7  ;;  %v3383_v9 = vpop.f32.mrb[5].mxu0 }
 0x282   : > { %v1189_v10 = vpop.f32.mrb[6].mxu0 }
 0x283   : > { %v3384_v11 = vpop.f32.mrb[7].mxu0  ;;  %v1343_v12 = vsel %vm1145_vm3, %v1339_v8, -inf }
 0x284   : > { %1344 = vmax.xlane.f32.xlu0 %v1343_v12 }
 0x288   : > { %v1235_v13 = vpop.f32.mrb[12].mxu1  ;;  %v1284_v14 = vpop.f32.mrb[8].mxu0 }
 0x289   : > { %v1340_v15 = vmul.f32 0.35355338, %v1235_v13  ;;  %v1341_v16 = vmul.f32 0.35355338, %v1284_v14  ;;  %v3389_v17 = vpop.f32.mrb[13].mxu1  ;;  %v3395_v18 = vpop.f32.mrb[9].mxu0 }
 0x28a   : > { %v1238_v19 = vpop.f32.mrb[14].mxu1  ;;  %v1287_v20 = vpop.f32.mrb[10].mxu0  ;;  %v910_v14 = vld [vmem:[%s3878_s25] sm:$0xff]  ;;  %v911_v17 = vld [vmem:[%s3878_s25 + $0x8] sm:$0xff] }
 0x28b   : > { %v3390_v23 = vpop.f32.mrb[15].mxu1  ;;  %v3396_v24 = vpop.f32.mrb[11].mxu0  ;;  %v1349_v25 = vsel %vm1145_vm3, %v1341_v16, -inf  ;;  %v1346_v26 = vsel %vm1145_vm3, %v1340_v15, -inf  ;;  %v1589_v18 = vpack.c.bf16 %v911_v17, %v911_v17  ;;  %v912_v20 = vld [vmem:[%s3878_s25 + $0x10] sm:$0xff]  ;;  %v917_v17 = vld [vmem:[%s3898_s14] sm:$0xff] }
 0x28c   : > { %1350 = vmax.xlane.f32.xlu0 %v1349_v25  ;;  %1347 = vmax.xlane.f32.xlu1 %v1346_v26  ;;  %v1590_v23 = vpack.c.bf16 %v912_v20, %v912_v20  ;;  %v920_v20 = vld [vmem:[%s3898_s14 + $0x18] sm:$0xff] }
 0x28d   : > { %v1642_v19 = vsel %vm1396_vm4, %v1589_v18, 0  ;;  %v918_v18 = vld [vmem:[%s3898_s14 + $0x8] sm:$0xff] }
 0x290   : > { %v1333_v27 = vpop.f32.mrb[16].mxu1 }
 0x291   : > { %v1342_v28 = vmul.f32 0.35355338, %v1333_v27  ;;  %v3401_v29 = vpop.f32.mrb[17].mxu1  ;;  %v1688_v27 = vsel %vm1396_vm4, %v1590_v23, 0 }
 0x292   : > { %v1336_v30 = vpop.f32.mrb[18].mxu1 }
 0x293   : > { %v3402_v31 = vpop.f32.mrb[19].mxu1  ;;  %v1352_v32 = vsel %vm1145_vm3, %v1342_v28, -inf  ;;  %v913_v30 = vld [vmem:[%s3878_s25 + $0x18] sm:$0xff] }
 0x294   : > { %1353 = vmax.xlane.f32.xlu0 %v1352_v32  ;;  %v1591_v31 = vpack.c.bf16 %v913_v30, %v913_v30  ;;  %v926_v30 = vld [vmem:[%s3908_s24 + $0x20] sm:$0xff] }
 0x29d   : > { %1391 = vrot.lane.b32.xlu1 %v4106_v44, %s3843_s7 }
 0x311   : > { %v1345_v33 = vpop.xlane.xlu0 %1344 }
 0x312   : > { %v1355_v34 = vsub.f32 %v1339_v8, %v1345_v33 }
 0x314   : > { %v1359_v35 = vmul.f32 1.442695, %v1355_v34 }
 0x316   : > { %3692 = vpow2.f32 %v1359_v35 }
 0x319   : > { %v1351_v36 = vpop.xlane.xlu0 %1350  ;;  %v1348_v37 = vpop.xlane.xlu1 %1347 }
 0x31a   : > { %v1357_v38 = vsub.f32 %v1341_v16, %v1351_v36  ;;  %v1356_v39 = vsub.f32 %v1340_v15, %v1348_v37  ;;  %v1588_v15 = vpack.c.bf16 %v910_v14, %v910_v14 }
 0x31c   : > { %v1363_v40 = vmul.f32 1.442695, %v1357_v38  ;;  %v1361_v41 = vmul.f32 1.442695, %v1356_v39  ;;  %v1596_v16 = vsel %vm1396_vm4, %v1588_v15, 0  ;;  %v1734_v39 = vsel %vm1396_vm4, %v1591_v31, 0 }
 0x31d   : > { %v1392_v42 = vpop.permute.xlu1 %1391  ;;  %v927_v31 = vld [vmem:[%s3908_s24 + $0x28] sm:$0xff] }
 0x31e   : > { %3694 = vpow2.f32 %v1363_v40  ;;  %v1398_v43 = vsel %vm1396_vm4, %v1392_v42, 0 }
 0x31f   : > { %3696 = vpow2.f32 %v1361_v41  ;;  %3404 = vmatpush3.bf16.msra.mxu0 %v1398_v43 }
 0x320   : > { %v3693_v45 = vpop.eup %3692  ;;  %3415 = vmatprep.subr.bf16.mxu0 %v3840_v4 }
 0x321   : > { %v1354_v44 = vpop.xlane.xlu0 %1353  ;;  %v1367_v47 = vsel %vm1145_vm3, %v3693_v45, 0.0 }
 0x322   : > { %v1358_v48 = vsub.f32 %v1342_v28, %v1354_v44  ;;  %1368 = vadd.xlane.f32.xlu1 %v1367_v47 }
 0x324   : > { %v1365_v49 = vmul.f32 1.442695, %v1358_v48 }
 0x326   : > { %3698 = vpow2.f32 %v1365_v49 }
 0x328   : > { %v3695_v50 = vpop.eup %3694 }
 0x329   : > { %v3697_v51 = vpop.eup %3696  ;;  %v1373_v52 = vsel %vm1145_vm3, %v3695_v50, 0.0 }
 0x32a   : > { %1374 = vadd.xlane.f32.xlu1 %v1373_v52  ;;  %v1370_v54 = vsel %vm1145_vm3, %v3697_v51, 0.0 }
 0x32b   : > { %1371 = vadd.xlane.f32.xlu0 %v1370_v54 }
 0x330   : > { %v3699_v55 = vpop.eup %3698 }
 0x331   : > { %v1376_v56 = vsel %vm1145_vm3, %v3699_v55, 0.0 }
 0x332   : > { %1377 = vadd.xlane.f32.xlu0 %v1376_v56 }
 0x33b   : > { %1488 = vrot.lane.b32.xlu1 %v4108_v46, %s3843_s7 }
 0x33f   : > { %1536 = vrot.lane.b32.xlu1 %v4120_v60, %s3843_s7 }
 0x348   : > { %1440 = vrot.lane.b32.xlu0 %v4115_v53, %s3843_s7 }
 0x3af   : > { %v1369_v57 = vpop.xlane.xlu1 %1368 }
 0x3b0   : > { %3700 = vrcp.f32 %v1369_v57 }
 0x3b7   : > { %v1375_v58 = vpop.xlane.xlu1 %1374 }
 0x3b8   : > { %3702 = vrcp.f32 %v1375_v58  ;;  %v1372_v59 = vpop.xlane.xlu0 %1371 }
 0x3b9   : > { %3704 = vrcp.f32 %v1372_v59 }
 0x3ba   : > { %v3701_v61 = vpop.eup %3700 }
 0x3bb   : > { %v1383_v62 = vmul.f32 %v3701_v61, %v3693_v45  ;;  %v1489_v63 = vpop.permute.xlu1 %1488 }
 0x3bc   : > { %v1494_v1 = vsel %vm1396_vm4, %v1489_v63, 0 }
 0x3bd   : > { %v1387_v0 = vpack.c.bf16 %v1383_v62, %v1383_v62 }
 0x3bf   : > { %3406 = vmatmul.mubr.msk.bf16.vlgmr.msra.gmra.mrb[12].mxu0 %vm1145_vm3, %v1387_v0  ;;  %v1378_v46 = vpop.xlane.xlu0 %1377  ;;  %v1537_v7 = vpop.permute.xlu1 %1536 }
 0x3c0   : > { %3416 = vmatpush3.bf16.msra.mxu0 %v1494_v1  ;;  %3706 = vrcp.f32 %v1378_v46  ;;  %3417 = vmatprep.mubr.msk.bf16.mxu0 %vm3841_vm0, %v3840_v4  ;;  %v1542_v10 = vsel %vm1396_vm4, %v1537_v7, 0 }
 0x3c1   : > { %3427 = vmatprep.subr.bf16.mxu0 %v3840_v4 }
 0x3c2   : > { %v3703_v53 = vpop.eup %3702 }
 0x3c3   : > { %v3705_v60 = vpop.eup %3704  ;;  %v1385_v2 = vmul.f32 %v3703_v53, %v3695_v50  ;;  %v1441_v3 = vpop.permute.xlu0 %1440 }
 0x3c4   : > { %v1384_v5 = vmul.f32 %v3705_v60, %v3697_v51  ;;  %v1446_v6 = vsel %vm1396_vm4, %v1441_v3, 0 }
 0x3c5   : > { %3410 = vmatpush3.bf16.msra.mxu1 %v1446_v6  ;;  %v1389_v8 = vpack.c.bf16 %v1385_v2, %v1385_v2  ;;  %v3206_v2 = vld [vmem:[%s3883_s29] ss:$0 sm:$0xff] }
 0x3c6   : > { %v1388_v9 = vpack.c.bf16 %v1384_v5, %v1384_v5  ;;  %3421 = vmatprep.subr.bf16.mxu1 %v3840_v4 }
 0x3c7   : > { %3418 = vmatmul.mubr.msk.bf16.vlgmr.msra.gmra.mrb[16].mxu0 %vm1145_vm3, %v1389_v8 }
 0x3c8   : > { %3412 = vmatmul.mubr.msk.bf16.vlgmr.msra.gmra.mrb[20].mxu1 %vm1145_vm3, %v1388_v9  ;;  %3429 = vmatprep.mubr.msk.bf16.mxu0 %vm3841_vm0, %v3840_v4 }
 0x3c9   : > { %3422 = vmatpush3.bf16.msra.mxu1 %v1542_v10  ;;  %3423 = vmatprep.mubr.msk.bf16.mxu1 %vm3841_vm0, %v3840_v4 }
 0x3ca   : > { %v3707_v11 = vpop.eup %3706  ;;  %3433 = vmatprep.subr.bf16.mxu1 %v3840_v4  ;;  %3428 = vmatpush3.bf16.msra.mxu0 %v1596_v16 }
 0x3cb   : > { %v1386_v12 = vmul.f32 %v3707_v11, %v3699_v55  ;;  %3439 = vmatprep.subr.bf16.mxu0 %v3840_v4 }
 0x3cd   : > { %v1390_v13 = vpack.c.bf16 %v1386_v12, %v1386_v12 }
 0x3d0   : > { %3424 = vmatmul.mubr.msk.bf16.vlgmr.msra.gmra.mrb[24].mxu1 %vm1145_vm3, %v1390_v13 }
 0x3d1   : > { %3435 = vmatprep.mubr.msk.bf16.mxu1 %vm3841_vm0, %v3840_v4  ;;  %3434 = vmatpush3.bf16.msra.mxu1 %v1642_v19  ;;  %v1820_v19 = vpack.c.bf16 %v918_v18, %v917_v17  ;;  %v1957_v17 = vld [vmem:[%s3928_s20 + $0x8] sm:$0xff] }
 0x3d2   : > { %3445 = vmatprep.subr.bf16.mxu1 %v3840_v4 }
 0x492   : > { %v1434_v24 = vpop.f32.mrb[12].mxu0 }
 0x493   : > { %v1584_v25 = vpack.c.bf16 %v1434_v24, %v1434_v24  ;;  %v3407_v26 = vpop.f32.mrb[13].mxu0  ;;  %v922_v24 = vld [vmem:[%s3908_s24] sm:$0xff] }
 0x494   : > { %v1437_v28 = vpop.f32.mrb[14].mxu0  ;;  %v924_v26 = vld [vmem:[%s3908_s24 + $0x10] sm:$0xff] }
 0x495   : > { %v3408_v29 = vpop.f32.mrb[15].mxu0  ;;  %3430 = vmatmul.mubr.msk.bf16.vlgmr.msra.gmra.mrb[20].mxu0 %vm1145_vm3, %v1584_v25  ;;  %v923_v25 = vld [vmem:[%s3908_s24 + $0x8] sm:$0xff]  ;;  %v925_v28 = vld [vmem:[%s3908_s24 + $0x18] sm:$0xff] }
 0x496   : > { %3440 = vmatpush3.bf16.msra.mxu0 %v1688_v27  ;;  %3441 = vmatprep.mubr.msk.bf16.mxu0 %vm3841_vm0, %v3840_v4  ;;  %v1873_v27 = vpack.c.bf16 %v923_v25, %v922_v24  ;;  %v1874_v29 = vpack.c.bf16 %v925_v28, %v924_v26 }
 0x497   : > { %3451 = vmatprep.subr.bf16.mxu0 %v3840_v4 }
 0x49a   : > { %v1530_v32 = vpop.f32.mrb[16].mxu0 }
 0x49b   : > { %v1586_v33 = vpack.c.bf16 %v1530_v32, %v1530_v32  ;;  %v1482_v34 = vpop.f32.mrb[20].mxu1  ;;  %v3419_v35 = vpop.f32.mrb[17].mxu0  ;;  %v1875_v32 = vpack.c.bf16 %v927_v31, %v926_v30 }
 0x49c   : > { %v1585_v36 = vpack.c.bf16 %v1482_v34, %v1482_v34  ;;  %v3413_v37 = vpop.f32.mrb[21].mxu1  ;;  %v1533_v38 = vpop.f32.mrb[18].mxu0  ;;  %v929_v34 = vld [vmem:[%s3908_s24 + $0x38] sm:$0xff] }
 0x49d   : > { %v1485_v40 = vpop.f32.mrb[22].mxu1  ;;  %v3420_v41 = vpop.f32.mrb[19].mxu0  ;;  %3442 = vmatmul.mubr.msk.bf16.vlgmr.msra.gmra.mrb[24].mxu0 %vm1145_vm3, %v1586_v33  ;;  %v928_v33 = vld [vmem:[%s3908_s24 + $0x30] sm:$0xff]  ;;  %v931_v37 = vld [vmem:[%s3908_s24 + $0x48] sm:$0xff] }
 0x49e   : > { %v3414_v42 = vpop.f32.mrb[23].mxu1  ;;  %3436 = vmatmul.mubr.msk.bf16.vlgmr.msra.gmra.mrb[28].mxu1 %vm1145_vm3, %v1585_v36  ;;  %3455 = vmatprep.mubr.msk.bf16.mxu0 %vm3841_vm0, %v3840_v4  ;;  %v1876_v35 = vpack.c.bf16 %v929_v34, %v928_v33  ;;  %v930_v36 = vld [vmem:[%s3908_s24 + $0x40] sm:$0xff]  ;;  %v933_v40 = vld [vmem:[%s3908_s24 + $0x58] sm:$0xff]  ;;  %v1961_v33 = vld [vmem:[%s3928_s20 + $0x28] sm:$0xff] }
 0x49f   : > { %3446 = vmatpush3.bf16.msra.mxu1 %v1734_v39  ;;  %3447 = vmatprep.mubr.msk.bf16.mxu1 %vm3841_vm0, %v3840_v4  ;;  %v1877_v38 = vpack.c.bf16 %v931_v37, %v930_v36  ;;  %v932_v39 = vld [vmem:[%s3908_s24 + $0x50] sm:$0xff] }
 0x4a0   : > { %3459 = vmatprep.subr.bf16.mxu1 %v3840_v4  ;;  %3452 = vmatpush3.bf16.msra.mxu0 %v1820_v19  ;;  %v1878_v41 = vpack.c.bf16 %v933_v40, %v932_v39  ;;  %v1958_v19 = vld [vmem:[%s3928_s20 + $0x10] sm:$0xff]  ;;  %v1964_v40 = vld [vmem:[%s3928_s20 + $0x40] sm:$0xff] }
 0x4a1   : > { %3453 = vmatprep.subr.bf16.mxu0 %v3840_v4  ;;  %v1962_v37 = vld [vmem:[%s3928_s20 + $0x30] sm:$0xff] }
 0x4a3   : > { %v1578_v43 = vpop.f32.mrb[24].mxu1 }
 0x4a4   : > { %v1587_v45 = vpack.c.bf16 %v1578_v43, %v1578_v43  ;;  %v3425_v44 = vpop.f32.mrb[25].mxu1 }
 0x4a5   : > { %v1581_v47 = vpop.f32.mrb[26].mxu1 }
 0x4a6   : > { %v3426_v48 = vpop.f32.mrb[27].mxu1  ;;  %3448 = vmatmul.mubr.msk.bf16.vlgmr.msra.gmra.mrb[32].mxu1 %vm1145_vm3, %v1587_v45  ;;  %v3207_v47 = vld [vmem:[%s4532_s3] ss:$0 sm:$0xff]  ;;  %s4542_s3 = sld [smem:[#allocation18_spill]] }
 0x4a7   : > { %3475 = vmatprep.mubr.msk.bf16.mxu1 %vm3841_vm0, %v3840_v4  ;;  %3460 = vmatpush3.bf16.msra.mxu1 %v1873_v27  ;;  %v3212_v27 = vld [vmem:[%s4534_s11] ss:$0 sm:$0xff]  ;;  %s4539_s11 = sld [smem:[#allocation19_spill]] }
 0x4a8   : > { %3461 = vmatprep.subr.bf16.mxu1 %v3840_v4 }
 0x4ab   : > { %3462 = vmatpush3.bf16.msra.mxu1 %v1874_v29  ;;  %v3213_v29 = vld [vmem:[%s4535_s27] ss:$0 sm:$0xff]  ;;  %s4540_s27 = sld [smem:[#allocation21_spill]] }
 0x4ac   : > { %3463 = vmatprep.subr.bf16.mxu1 %v3840_v4 }
 0x4af   : > { %3464 = vmatpush3.bf16.msra.mxu1 %v1875_v32  ;;  %v1960_v32 = vld [vmem:[%s3928_s20 + $0x20] sm:$0xff] }
 0x4b0   : > { %3465 = vmatprep.subr.bf16.mxu1 %v3840_v4 }
 0x4b3   : > { %3466 = vmatpush3.bf16.msra.mxu1 %v1876_v35  ;;  %v2010_v35 = vpack.c.bf16 %v1961_v33, %v1960_v32 }
 0x4b4   : > { %3467 = vmatprep.subr.bf16.mxu1 %v3840_v4 }
 0x4b7   : > { %3468 = vmatpush3.bf16.msra.mxu1 %v1877_v38  ;;  %v1963_v38 = vld [vmem:[%s3928_s20 + $0x38] sm:$0xff] }
 0x4b8   : > { %3469 = vmatprep.subr.bf16.mxu1 %v3840_v4  ;;  %v2011_v39 = vpack.c.bf16 %v1963_v38, %v1962_v37 }
 0x4bb   : > { %3470 = vmatpush3.bf16.msra.mxu1 %v1878_v41  ;;  %v1965_v41 = vld [vmem:[%s3928_s20 + $0x48] sm:$0xff] }
 0x4bc   : > { %3471 = vmatprep.subr.bf16.mxu1 %v3840_v4 }
 0x568   : > { %v1632_v49 = vpop.f32.mrb[20].mxu0 }
 0x569   : > { %v3431_v50 = vpop.f32.mrb[21].mxu0  ;;  %v1776_v57 = vsel %vm974_vm2, %v1632_v49, 0.0  ;;  %v3208_v49 = vld [vmem:[%s4533_s8] ss:$0 sm:$0xff]  ;;  %s4544_s8 = sld [smem:[#allocation22_spill]] }
 0x56a   : > { %v1635_v51 = vpop.f32.mrb[22].mxu0 }
 0x56b   : > { %v3432_v52 = vpop.f32.mrb[23].mxu0 }
 0x570   : > { %v1724_v54 = vpop.f32.mrb[24].mxu0 }
 0x571   : > { %v1678_v55 = vpop.f32.mrb[28].mxu1  ;;  %v3443_v56 = vpop.f32.mrb[25].mxu0  ;;  %v1779_v1 = vsel %vm974_vm2, %v1724_v54, 0.0  ;;  %v934_v54 = vld [vmem:[%s3908_s24 + $0x60] sm:$0xff] }
 0x572   : > { %v1777_v58 = vsel %vm974_vm2, %v1678_v55, 0.0  ;;  %v3437_v59 = vpop.f32.mrb[29].mxu1  ;;  %v1727_v61 = vpop.f32.mrb[26].mxu0  ;;  %v935_v55 = vld [vmem:[%s3908_s24 + $0x68] sm:$0xff] }
 0x573   : > { %v1778_v62 = vadd.f32 %v1777_v58, %v1776_v57  ;;  %v1681_v63 = vpop.f32.mrb[30].mxu1  ;;  %v3444_v0 = vpop.f32.mrb[27].mxu0  ;;  %v1879_v56 = vpack.c.bf16 %v935_v55, %v934_v54  ;;  %v936_v57 = vld [vmem:[%s3908_s24 + $0x70] sm:$0xff]  ;;  %v937_v58 = vld [vmem:[%s3908_s24 + $0x78] sm:$0xff]  ;;  %v3209_v61 = vld [vmem:[%s3903_s19] ss:$0 sm:$0xff] }
 0x574   : > { %v3438_v46 = vpop.f32.mrb[31].mxu1  ;;  %v1880_v59 = vpack.c.bf16 %v937_v58, %v936_v57  ;;  %v3214_v54 = vld [vmem:[%s4536_s26] ss:$0 sm:$0xff] }
 0x575   : > { %v1780_v53 = vadd.f32 %v1779_v1, %v1778_v62  ;;  %3472 = vmatpush3.bf16.msra.mxu1 %v1879_v56 }
 0x576   : > { %3473 = vmatprep.subr.bf16.mxu1 %v3840_v4 }
 0x579   : > { %v1770_v60 = vpop.f32.mrb[32].mxu1  ;;  %3474 = vmatpush3.bf16.msra.mxu1 %v1880_v59 }
 0x57a   : > { %v1781_v3 = vsel %vm974_vm2, %v1770_v60, 0.0  ;;  %v3449_v5 = vpop.f32.mrb[33].mxu1  ;;  %3511 = vmatprep.subr.bf16.mxu1 %v3840_v4 }
 0x57b   : > { %v1782_v6 = vadd.f32 %v1781_v3, %v1780_v53  ;;  %v1773_v7 = vpop.f32.mrb[34].mxu1 }
 0x57c   : > { %v3450_v8 = vpop.f32.mrb[35].mxu1 }
 0x57d   : > { %v1789_v9 = vadd.f32 %v3206_v2, %v1782_v6  ;;  %v3211_v2 = vld [vmem:[%s3913_s30] ss:$0 sm:$0xff] }
 0x57f   : > { %v1790_v10 = vadd.f32 %v1789_v9, %v4077_v22  ;;  %v919_v22 = vld [vmem:[%s3898_s14 + $0x10] sm:$0xff] }
 0x580   : > { %v1821_v23 = vpack.c.bf16 %v920_v20, %v919_v22  ;;  %v1959_v22 = vld [vmem:[%s3928_s20 + $0x18] sm:$0xff] }
 0x581   : > { %v1791_v11 = vsel %vm974_vm2, %v1790_v10, 0.0  ;;  %v2009_v20 = vpack.c.bf16 %v1959_v22, %v1958_v19 }
 0x582   : > { %1792 = vadd.xlane.f32.xlu0 %v1791_v11  ;;  %3454 = vmatpush3.bf16.msra.mxu0 %v1821_v23 }
 0x583   : > { %3479 = vmatprep.subr.bf16.mxu0 %v3840_v4 }
 0x60f   : > { %v1793_v12 = vpop.xlane.xlu0 %1792 }
 0x610   : > { %v1795_v13 = vmul.f32 0.03125, %v1793_v12 }
 0x612   : > { %v1796_v14 = vsub.f32 %v1790_v10, %v1795_v13 }
 0x614   : > { %v1797_v15 = vmul.f32 %v1796_v14, %v1796_v14 }
 0x616   : > { %v1798_v16 = vsel %vm974_vm2, %v1797_v15, 0.0 }
 0x617   : > { %1799 = vadd.xlane.f32.xlu1 %v1798_v16  ;;  %v1956_v16 = vld [vmem:[%s3928_s20] sm:$0xff] }
 0x618   : > { %v2008_v18 = vpack.c.bf16 %v1957_v17, %v1956_v16 }
 0x6a4   : > { %v1800_v42 = vpop.xlane.xlu1 %1799 }
 0x6a5   : > { %v1801_v43 = vmul.f32 0.03125, %v1800_v42  ;;  %v2012_v42 = vpack.c.bf16 %v1965_v41, %v1964_v40 }
 0x6a7   : > { %v1802_v45 = vadd.f32 1e-05, %v1801_v43  ;;  %v1966_v43 = vld [vmem:[%s3928_s20 + $0x50] sm:$0xff] }
 0x6a9   : > { %3708 = vrsqrt.f32 %v1802_v45  ;;  %v1967_v45 = vld [vmem:[%s3928_s20 + $0x58] sm:$0xff] }
 0x6b3   : > { %v3709_v44 = vpop.eup %3708 }
 0x6b4   : > { %v1804_v48 = vmul.f32 %v3709_v44, %v1796_v14  ;;  %v2013_v44 = vpack.c.bf16 %v1967_v45, %v1966_v43 }
 0x6b6   : > { %v1811_v50 = vmul.f32 %v3207_v47, %v1804_v48  ;;  %v1968_v47 = vld [vmem:[%s3928_s20 + $0x60] sm:$0xff]  ;;  %v1969_v48 = vld [vmem:[%s3928_s20 + $0x68] sm:$0xff] }
 0x6b8   : > { %v1818_v51 = vadd.f32 %v3208_v49, %v1811_v50  ;;  %v2014_v49 = vpack.c.bf16 %v1969_v48, %v1968_v47  ;;  %v1970_v50 = vld [vmem:[%s3928_s20 + $0x70] sm:$0xff] }
 0x6ba   : > { %v1819_v52 = vpack.c.bf16 %v1818_v51, %v1818_v51 }
 0x6bc   : > { %3456 = vmatmul.mubr.msk.bf16.vlgmr.msra.gmra.mrb[28].mxu0 %vm974_vm2, %v1819_v52 }
 0x6bd   : > { %3483 = vmatprep.mubr.msk.bf16.mxu0 %vm3841_vm0, %v3840_v4  ;;  %3480 = vmatpush3.bf16.msra.mxu0 %v2008_v18 }
 0x6be   : > { %3481 = vmatprep.subr.bf16.mxu0 %v3840_v4 }
 0x6c1   : > { %3482 = vmatpush3.bf16.msra.mxu0 %v2009_v20 }
 0x6c2   : > { %3487 = vmatprep.subr.bf16.mxu0 %v3840_v4 }
 0x78f   : > { %v1865_v62 = vpop.f32.mrb[28].mxu0 }
 0x790   : > { %v1866_v63 = vadd.f32 %v3209_v61, %v1865_v62  ;;  %v3457_v0 = vpop.f32.mrb[29].mxu0  ;;  %v3215_v62 = vld [vmem:[%s4536_s26 + $0x1] ss:$0 sm:$0xff] }
 0x791   : > { %v1868_v1 = vpop.f32.mrb[30].mxu0 }
 0x792   : > { %v1871_v46 = vmax.f32 %v1866_v63, 0.0  ;;  %v3458_v53 = vpop.f32.mrb[31].mxu0 }
 0x794   : > { %v1872_v60 = vpack.c.bf16 %v1871_v46, %v1871_v46 }
 0x796   : > { %3476 = vmatmul.mubr.bf16.vlgmr.msra.gmra.mrb[36].mxu1 %v1872_v60 }
 0x797   : > { %3513 = vmatprep.mubr.msk.bf16.mxu1 %vm3841_vm0, %v3840_v4 }
 0x869   : > { %v1921_v3 = vpop.f32.mrb[36].mxu1 }
 0x86a   : > { %v1922_v5 = vadd.f32 %v3211_v2, %v1921_v3  ;;  %v3477_v6 = vpop.f32.mrb[37].mxu1  ;;  %v3216_v2 = vld [vmem:[%s4536_s26 + $0x2] ss:$0 sm:$0xff] }
 0x86b   : > { %v1924_v7 = vpop.f32.mrb[38].mxu1 }
 0x86c   : > { %v3478_v8 = vpop.f32.mrb[39].mxu1  ;;  %v1927_v9 = vadd.f32 %v1922_v5, %v1818_v51  ;;  %v1971_v51 = vld [vmem:[%s3928_s20 + $0x78] sm:$0xff] }
 0x86d   : > { %v2015_v52 = vpack.c.bf16 %v1971_v51, %v1970_v50 }
 0x86e   : > { %v1928_v10 = vsel %vm974_vm2, %v1927_v9, 0.0 }
 0x86f   : > { %1929 = vadd.xlane.f32.xlu0 %v1928_v10  ;;  %v3217_v10 = vld [vmem:[%s4536_s26 + $0x3] ss:$0 sm:$0xff] }
 0x8fc   : > { %v1930_v11 = vpop.xlane.xlu0 %1929 }
 0x8fd   : > { %v1931_v12 = vmul.f32 0.03125, %v1930_v11 }
 0x8ff   : > { %v1932_v13 = vsub.f32 %v1927_v9, %v1931_v12 }
 0x901   : > { %v1933_v14 = vmul.f32 %v1932_v13, %v1932_v13 }
 0x903   : > { %v1934_v15 = vsel %vm974_vm2, %v1933_v14, 0.0 }
 0x904   : > { %1935 = vadd.xlane.f32.xlu0 %v1934_v15 }
 0x991   : > { %v1936_v23 = vpop.xlane.xlu0 %1935 }
 0x992   : > { %v1937_v24 = vmul.f32 0.03125, %v1936_v23 }
 0x994   : > { %v1938_v25 = vadd.f32 1e-05, %v1937_v24 }
 0x996   : > { %3710 = vrsqrt.f32 %v1938_v25 }
 0x9a0   : > { %v3711_v26 = vpop.eup %3710 }
 0x9a1   : > { %v1940_v28 = vmul.f32 %v3711_v26, %v1932_v13 }
 0x9a3   : > { %v1947_v30 = vmul.f32 %v3212_v27, %v1940_v28 }
 0x9a5   : > { %v1954_v31 = vadd.f32 %v3213_v29, %v1947_v30 }
 0x9a7   : > { %v4268_v34 = vmul.f32 %v4074_v21, %v1954_v31 }
 0x9a9   : > { %v2007_v36 = vpack.c.bf16 %v4268_v34, %v4268_v34 }
 0x9ab   : > { %3484 = vmatmul.mubr.msk.bf16.vlgmr.msra.gmra.mrb[32].mxu0 %vm974_vm2, %v2007_v36 }
 0x9ac   : > { %3488 = vmatpush3.bf16.msra.mxu0 %v2010_v35  ;;  %3491 = vmatprep.mubr.msk.bf16.mxu0 %vm3841_vm0, %v3840_v4 }
 0x9ad   : > { %3489 = vmatprep.subr.bf16.mxu0 %v3840_v4 }
 0x9b0   : > { %3490 = vmatpush3.bf16.msra.mxu0 %v2011_v39 }
 0x9b1   : > { %3495 = vmatprep.subr.bf16.mxu0 %v3840_v4 }
 0x9b3   : > { %3492 = vmatmul.mubr.msk.bf16.vlgmr.msra.gmra.mrb[36].mxu0 %vm974_vm2, %v2007_v36 }
 0x9b4   : > { %3496 = vmatpush3.bf16.msra.mxu0 %v2012_v42  ;;  %3499 = vmatprep.mubr.msk.bf16.mxu0 %vm3841_vm0, %v3840_v4 }
 0x9b5   : > { %3497 = vmatprep.subr.bf16.mxu0 %v3840_v4 }
 0x9b8   : > { %3498 = vmatpush3.bf16.msra.mxu0 %v2013_v44 }
 0x9b9   : > { %3503 = vmatprep.subr.bf16.mxu0 %v3840_v4 }
 0x9bb   : > { %3500 = vmatmul.mubr.msk.bf16.vlgmr.msra.gmra.mrb[40].mxu0 %vm974_vm2, %v2007_v36 }
 0x9bc   : > { %3504 = vmatpush3.bf16.msra.mxu0 %v2014_v49  ;;  %3507 = vmatprep.mubr.msk.bf16.mxu0 %vm3841_vm0, %v3840_v4 }
 0x9bd   : > { %3505 = vmatprep.subr.bf16.mxu0 %v3840_v4 }
 0x9c0   : > { %3506 = vmatpush3.bf16.msra.mxu0 %v2015_v52 }
 0x9c1   : > { %3517 = vmatprep.subr.bf16.mxu0 %v3840_v4 }
 0x9c3   : > { %3508 = vmatmul.mubr.msk.bf16.vlgmr.msra.gmra.mrb[44].mxu0 %vm974_vm2, %v2007_v36 }
 0x9c4   : > { %3519 = vmatprep.mubr.msk.bf16.mxu0 %vm3841_vm0, %v3840_v4 }
 0xa7e   : > { %v2077_v55 = vpop.f32.mrb[32].mxu0 }
 0xa7f   : > { %v2078_v56 = vadd.f32 %v3214_v54, %v2077_v55  ;;  %v3485_v57 = vpop.f32.mrb[33].mxu0 }
 0xa80   : > { %v2080_v58 = vpop.f32.mrb[34].mxu0 }
 0xa81   : > { %v4301_v59 = vpack.c.bf16 %v2078_v56, %v2078_v56  ;;  %v3486_v61 = vpop.f32.mrb[35].mxu0 }
 0xa83   : > { %2208 = vrot.lane.b32.xlu1 %v4301_v59, %s3842_s4 }
 0xa86   : > { %v2117_v63 = vpop.f32.mrb[36].mxu0 }
 0xa87   : > { %v2118_v0 = vadd.f32 %v3215_v62, %v2117_v63  ;;  %v3493_v1 = vpop.f32.mrb[37].mxu0 }
 0xa88   : > { %v2120_v46 = vpop.f32.mrb[38].mxu0 }
 0xa89   : > { %v4306_v53 = vpack.c.bf16 %v2118_v0, %v2118_v0  ;;  %v3494_v60 = vpop.f32.mrb[39].mxu0 }
 0xa8b   : > { %2257 = vrot.lane.b32.xlu0 %v4306_v53, %s3842_s4 }
 0xa8e   : > { %v2157_v3 = vpop.f32.mrb[40].mxu0 }
 0xa8f   : > { %v2158_v5 = vadd.f32 %v3216_v2, %v2157_v3  ;;  %v3501_v6 = vpop.f32.mrb[41].mxu0 }
 0xa90   : > { %v2160_v7 = vpop.f32.mrb[42].mxu0 }
 0xa91   : > { %v4311_v8 = vpack.c.bf16 %v2158_v5, %v2158_v5  ;;  %v3502_v9 = vpop.f32.mrb[43].mxu0 }
 0xa93   : > { %2306 = vrot.lane.b32.xlu1 %v4311_v8, %s3842_s4 }
 0xa96   : > { %v2197_v11 = vpop.f32.mrb[44].mxu0 }
 0xa97   : > { %v2198_v12 = vadd.f32 %v3217_v10, %v2197_v11  ;;  %v3509_v13 = vpop.f32.mrb[45].mxu0 }
 0xa98   : > { %v2200_v14 = vpop.f32.mrb[46].mxu0 }
 0xa99   : > { %v4316_v15 = vpack.c.bf16 %v2198_v12, %v2198_v12  ;;  %v3510_v16 = vpop.f32.mrb[47].mxu0 }
 0xa9b   : > { %2355 = vrot.lane.b32.xlu1 %v4316_v15, %s3842_s4  ;;  %s4537_s4 = sld [smem:[#allocation15_spill]] }
 0xaf5   : > { %v2209_v17 = vpop.permute.xlu1 %2208 }
 0xaf6   : > { %v2214_v18 = vsel %vm1145_vm3, %v2209_v17, 0 }
 0xaf7   : > { %3512 = vmatpush3.bf16.xpose.msra.mxu1 %v2214_v18 }
 0xaf8   : > { %3523 = vmatprep.subr.bf16.mxu1 %v3840_v4 }
 0xafd   : > { %v2258_v19 = vpop.permute.xlu0 %2257 }
 0xafe   : > { %v2263_v22 = vsel %vm1145_vm3, %v2258_v19, 0  ;;  %3514 = vmatmul.mubr.msk.bf16.vlgmr.msra.gmra.mrb[40].mxu1 %vm1145_vm3, %v4301_v59 }
 0xaff   : > { %3518 = vmatpush3.bf16.xpose.msra.mxu0 %v2263_v22  ;;  %3525 = vmatprep.mubr.msk.bf16.mxu1 %vm3841_vm0, %v3840_v4 }
 0xb00   : > { %3529 = vmatprep.subr.bf16.mxu0 %v3840_v4 }
 0xb05   : > { %v2307_v20 = vpop.permute.xlu1 %2306 }
 0xb06   : > { %v2312_v23 = vsel %vm1145_vm3, %v2307_v20, 0  ;;  %3520 = vmatmul.mubr.msk.bf16.vlgmr.msra.gmra.mrb[48].mxu0 %vm1145_vm3, %v4306_v53 }
 0xb07   : > { %3524 = vmatpush3.bf16.xpose.msra.mxu1 %v2312_v23  ;;  %3531 = vmatprep.mubr.msk.bf16.mxu0 %vm3841_vm0, %v3840_v4 }
 0xb08   : > { %3535 = vmatprep.subr.bf16.mxu1 %v3840_v4 }
 0xb0d   : > { %v2356_v24 = vpop.permute.xlu1 %2355 }
 0xb0e   : > { %v2361_v25 = vsel %vm1145_vm3, %v2356_v24, 0  ;;  %3526 = vmatmul.mubr.msk.bf16.vlgmr.msra.gmra.mrb[44].mxu1 %vm1145_vm3, %v4311_v8 }
 0xb0f   : > { %3530 = vmatpush3.bf16.xpose.msra.mxu0 %v2361_v25  ;;  %3537 = vmatprep.mubr.msk.bf16.mxu1 %vm3841_vm0, %v3840_v4 }
 0xb10   : > { %3541 = vmatprep.subr.bf16.mxu0 %v3840_v4 }
 0xb16   : > { %3532 = vmatmul.mubr.msk.bf16.vlgmr.msra.gmra.mrb[52].mxu0 %vm1145_vm3, %v4316_v15 }
 0xb17   : > { %3543 = vmatprep.mubr.msk.bf16.mxu0 %vm3841_vm0, %v3840_v4 }
 0xbd1   : > { %v2250_v26 = vpop.f32.mrb[40].mxu1 }
 0xbd2   : > { %v2403_v27 = vmul.f32 0.35355338, %v2250_v26  ;;  %v3515_v28 = vpop.f32.mrb[41].mxu1 }
 0xbd3   : > { %v2253_v29 = vpop.f32.mrb[42].mxu1 }
 0xbd4   : > { %v3516_v30 = vpop.f32.mrb[43].mxu1  ;;  %v2407_v31 = vsel %vm1145_vm3, %v2403_v27, -inf }
 0xbd5   : > { %2408 = vmax.xlane.f32.xlu0 %v2407_v31 }
 0xbd9   : > { %v2299_v32 = vpop.f32.mrb[48].mxu0 }
 0xbda   : > { %v2404_v33 = vmul.f32 0.35355338, %v2299_v32  ;;  %v3521_v35 = vpop.f32.mrb[49].mxu0 }
 0xbdb   : > { %v2302_v36 = vpop.f32.mrb[50].mxu0 }
 0xbdc   : > { %v3522_v37 = vpop.f32.mrb[51].mxu0  ;;  %v2410_v38 = vsel %vm1145_vm3, %v2404_v33, -inf }
 0xbdd   : > { %2411 = vmax.xlane.f32.xlu1 %v2410_v38  ;;  %v1977_v37 = vld [vmem:[%s4537_s4 + $0x8] sm:$0xff] }
 0xbde   : > { %v2652_v38 = vpack.c.bf16 %v1977_v37, %v1977_v37  ;;  %v1983_v37 = vld [vmem:[%s4539_s11] sm:$0xff] }
 0xbe1   : > { %v2348_v39 = vpop.f32.mrb[44].mxu1 }
 0xbe2   : > { %v2405_v40 = vmul.f32 0.35355338, %v2348_v39  ;;  %v3527_v41 = vpop.f32.mrb[45].mxu1  ;;  %v2705_v39 = vsel %vm1396_vm4, %v2652_v38, 0  ;;  %v1984_v38 = vld [vmem:[%s4539_s11 + $0x8] sm:$0xff] }
 0xbe3   : > { %v2351_v42 = vpop.f32.mrb[46].mxu1 }
 0xbe4   : > { %v3528_v43 = vpop.f32.mrb[47].mxu1  ;;  %v2413_v45 = vsel %vm1145_vm3, %v2405_v40, -inf }
 0xbe5   : > { %2414 = vmax.xlane.f32.xlu0 %v2413_v45 }
 0xbe9   : > { %v2397_v44 = vpop.f32.mrb[52].mxu0 }
 0xbea   : > { %v2406_v47 = vmul.f32 0.35355338, %v2397_v44  ;;  %v3533_v48 = vpop.f32.mrb[53].mxu0 }
 0xbeb   : > { %v2400_v49 = vpop.f32.mrb[54].mxu0 }
 0xbec   : > { %v3534_v50 = vpop.f32.mrb[55].mxu0  ;;  %v2416_v51 = vsel %vm1145_vm3, %v2406_v47, -inf  ;;  %v1979_v49 = vld [vmem:[%s4537_s4 + $0x18] sm:$0xff] }
 0xbed   : > { %2417 = vmax.xlane.f32.xlu0 %v2416_v51  ;;  %v2654_v50 = vpack.c.bf16 %v1979_v49, %v1979_v49  ;;  %v1992_v49 = vld [vmem:[%s4540_s27 + $0x20] sm:$0xff] }
 0xbee   : > { %2455 = vrot.lane.b32.xlu1 %v4301_v59, %s3843_s7 }
 0xc62   : > { %v2409_v52 = vpop.xlane.xlu0 %2408 }
 0xc63   : > { %v2419_v54 = vsub.f32 %v2403_v27, %v2409_v52 }
 0xc65   : > { %v2423_v55 = vmul.f32 1.442695, %v2419_v54 }
 0xc67   : > { %3712 = vpow2.f32 %v2423_v55 }
 0xc6a   : > { %v2412_v56 = vpop.xlane.xlu1 %2411 }
 0xc6b   : > { %v2420_v57 = vsub.f32 %v2404_v33, %v2412_v56  ;;  %v1976_v33 = vld [vmem:[%s4537_s4] sm:$0xff] }
 0xc6c   : > { %v2651_v35 = vpack.c.bf16 %v1976_v33, %v1976_v33 }
 0xc6d   : > { %v2425_v58 = vmul.f32 1.442695, %v2420_v57 }
 0xc6e   : > { %v2456_v61 = vpop.permute.xlu1 %2455  ;;  %v2659_v36 = vsel %vm1396_vm4, %v2651_v35, 0 }
 0xc6f   : > { %3714 = vpow2.f32 %v2425_v58  ;;  %v2461_v62 = vsel %vm1396_vm4, %v2456_v61, 0  ;;  %v2797_v61 = vsel %vm1396_vm4, %v2654_v50, 0  ;;  %v1993_v50 = vld [vmem:[%s4540_s27 + $0x28] sm:$0xff] }
 0xc70   : > { %3536 = vmatpush3.bf16.msra.mxu1 %v2461_v62 }
 0xc71   : > { %v3713_v63 = vpop.eup %3712  ;;  %3547 = vmatprep.subr.bf16.mxu1 %v3840_v4 }
 0xc72   : > { %v2415_v0 = vpop.xlane.xlu0 %2414  ;;  %v2431_v1 = vsel %vm1145_vm3, %v3713_v63, 0.0 }
 0xc73   : > { %v2421_v46 = vsub.f32 %v2405_v40, %v2415_v0  ;;  %2432 = vadd.xlane.f32.xlu1 %v2431_v1  ;;  %v1978_v40 = vld [vmem:[%s4537_s4 + $0x10] sm:$0xff]  ;;  %s4543_s4 = sld [smem:[#allocation20_spill]] }
 0xc74   : > { %v2653_v41 = vpack.c.bf16 %v1978_v40, %v1978_v40  ;;  %v1986_v40 = vld [vmem:[%s4539_s11 + $0x18] sm:$0xff] }
 0xc75   : > { %v2427_v59 = vmul.f32 1.442695, %v2421_v46 }
 0xc76   : > { %v2751_v44 = vsel %vm1396_vm4, %v2653_v41, 0 }
 0xc77   : > { %3716 = vpow2.f32 %v2427_v59 }
 0xc79   : > { %v3715_v60 = vpop.eup %3714 }
 0xc7a   : > { %v2418_v2 = vpop.xlane.xlu0 %2417  ;;  %v2434_v3 = vsel %vm1145_vm3, %v3715_v60, 0.0 }
 0xc7b   : > { %v2422_v5 = vsub.f32 %v2406_v47, %v2418_v2  ;;  %2435 = vadd.xlane.f32.xlu0 %v2434_v3 }
 0xc7d   : > { %v2429_v6 = vmul.f32 1.442695, %v2422_v5 }
 0xc7f   : > { %3718 = vpow2.f32 %v2429_v6 }
 0xc81   : > { %v3717_v7 = vpop.eup %3716 }
 0xc82   : > { %v2437_v9 = vsel %vm1145_vm3, %v3717_v7, 0.0 }
 0xc83   : > { %2438 = vadd.xlane.f32.xlu1 %v2437_v9 }
 0xc89   : > { %v3719_v10 = vpop.eup %3718 }
 0xc8a   : > { %v2440_v11 = vsel %vm1145_vm3, %v3719_v10, 0.0 }
 0xc8b   : > { %2441 = vadd.xlane.f32.xlu0 %v2440_v11 }
 0xc94   : > { %2551 = vrot.lane.b32.xlu1 %v4311_v8, %s3843_s7 }
 0xc98   : > { %2599 = vrot.lane.b32.xlu1 %v4316_v15, %s3843_s7 }
 0xca1   : > { %2503 = vrot.lane.b32.xlu0 %v4306_v53, %s3843_s7  ;;  %s4538_s7 = sld [smem:[#allocation16_spill]] }
 0xd00   : > { %v2433_v12 = vpop.xlane.xlu1 %2432 }
 0xd01   : > { %3720 = vrcp.f32 %v2433_v12 }
 0xd08   : > { %v2436_v14 = vpop.xlane.xlu0 %2435 }
 0xd09   : > { %3722 = vrcp.f32 %v2436_v14 }
 0xd0b   : > { %v3721_v13 = vpop.eup %3720 }
 0xd0c   : > { %v2447_v16 = vmul.f32 %v3721_v13, %v3713_v63 }
 0xd0e   : > { %v2451_v17 = vpack.c.bf16 %v2447_v16, %v2447_v16 }
 0xd10   : > { %3538 = vmatmul.mubr.msk.bf16.vlgmr.msra.gmra.mrb[48].mxu1 %vm1145_vm3, %v2451_v17  ;;  %v2439_v18 = vpop.xlane.xlu1 %2438 }
 0xd11   : > { %3724 = vrcp.f32 %v2439_v18  ;;  %3549 = vmatprep.mubr.msk.bf16.mxu1 %vm3841_vm0, %v3840_v4 }
 0xd13   : > { %v3723_v53 = vpop.eup %3722 }
 0xd14   : > { %v2552_v8 = vpop.permute.xlu1 %2551  ;;  %v2448_v20 = vmul.f32 %v3723_v53, %v3715_v60 }
 0xd15   : > { %v2557_v15 = vsel %vm1396_vm4, %v2552_v8, 0 }
 0xd16   : > { %3548 = vmatpush3.bf16.msra.mxu1 %v2557_v15  ;;  %v2452_v28 = vpack.c.bf16 %v2448_v20, %v2448_v20  ;;  %v3234_v20 = vld [vmem:[%s4538_s7] ss:$0 sm:$0xff]  ;;  %s4541_s7 = sld [smem:[#allocation17_spill]] }
 0xd17   : > { %3559 = vmatprep.subr.bf16.mxu1 %v3840_v4 }
 0xd18   : > { %v2442_v19 = vpop.xlane.xlu0 %2441  ;;  %v2600_v26 = vpop.permute.xlu1 %2599 }
 0xd19   : > { %3726 = vrcp.f32 %v2442_v19  ;;  %v2605_v29 = vsel %vm1396_vm4, %v2600_v26, 0 }
 0xd1b   : > { %v3725_v22 = vpop.eup %3724 }
 0xd1c   : > { %v2449_v23 = vmul.f32 %v3725_v22, %v3717_v7  ;;  %v2504_v24 = vpop.permute.xlu0 %2503 }
 0xd1d   : > { %v2509_v25 = vsel %vm1396_vm4, %v2504_v24, 0 }
 0xd1e   : > { %3542 = vmatpush3.bf16.msra.mxu0 %v2509_v25  ;;  %v2453_v27 = vpack.c.bf16 %v2449_v23, %v2449_v23 }
 0xd1f   : > { %3553 = vmatprep.subr.bf16.mxu0 %v3840_v4 }
 0xd20   : > { %3550 = vmatmul.mubr.msk.bf16.vlgmr.msra.gmra.mrb[52].mxu1 %vm1145_vm3, %v2453_v27 }
 0xd21   : > { %3544 = vmatmul.mubr.msk.bf16.vlgmr.msra.gmra.mrb[56].mxu0 %vm1145_vm3, %v2452_v28  ;;  %3561 = vmatprep.mubr.msk.bf16.mxu1 %vm3841_vm0, %v3840_v4 }
 0xd22   : > { %3554 = vmatpush3.bf16.msra.mxu0 %v2605_v29  ;;  %3555 = vmatprep.mubr.msk.bf16.mxu0 %vm3841_vm0, %v3840_v4 }
 0xd23   : > { %v3727_v30 = vpop.eup %3726  ;;  %3565 = vmatprep.subr.bf16.mxu0 %v3840_v4  ;;  %3560 = vmatpush3.bf16.msra.mxu1 %v2659_v36 }
 0xd24   : > { %v2450_v31 = vmul.f32 %v3727_v30, %v3719_v10  ;;  %3571 = vmatprep.subr.bf16.mxu1 %v3840_v4 }
 0xd26   : > { %v2454_v32 = vpack.c.bf16 %v2450_v31, %v2450_v31 }
 0xd29   : > { %3556 = vmatmul.mubr.msk.bf16.vlgmr.msra.gmra.mrb[60].mxu0 %vm1145_vm3, %v2454_v32 }
 0xd2a   : > { %3567 = vmatprep.mubr.msk.bf16.mxu0 %vm3841_vm0, %v3840_v4  ;;  %3566 = vmatpush3.bf16.msra.mxu0 %v2705_v39  ;;  %v2882_v39 = vpack.c.bf16 %v1984_v38, %v1983_v37  ;;  %v3019_v37 = vld [vmem:[%s3988_s23 + $0x8] sm:$0xff] }
 0xd2b   : > { %3577 = vmatprep.subr.bf16.mxu0 %v3840_v4 }
 0xde3   : > { %v2497_v42 = vpop.f32.mrb[48].mxu1 }
 0xde4   : > { %v2647_v43 = vpack.c.bf16 %v2497_v42, %v2497_v42  ;;  %v3539_v45 = vpop.f32.mrb[49].mxu1  ;;  %v1988_v42 = vld [vmem:[%s4540_s27] sm:$0xff] }
 0xde5   : > { %v2500_v47 = vpop.f32.mrb[50].mxu1  ;;  %v1990_v45 = vld [vmem:[%s4540_s27 + $0x10] sm:$0xff] }
 0xde6   : > { %v3540_v48 = vpop.f32.mrb[51].mxu1  ;;  %3562 = vmatmul.mubr.msk.bf16.vlgmr.msra.gmra.mrb[56].mxu1 %vm1145_vm3, %v2647_v43  ;;  %v1989_v43 = vld [vmem:[%s4540_s27 + $0x8] sm:$0xff]  ;;  %v1991_v47 = vld [vmem:[%s4540_s27 + $0x18] sm:$0xff] }
 0xde7   : > { %3572 = vmatpush3.bf16.msra.mxu1 %v2751_v44  ;;  %3573 = vmatprep.mubr.msk.bf16.mxu1 %vm3841_vm0, %v3840_v4  ;;  %v2935_v44 = vpack.c.bf16 %v1989_v43, %v1988_v42  ;;  %v2936_v48 = vpack.c.bf16 %v1991_v47, %v1990_v45 }
 0xde8   : > { %3583 = vmatprep.subr.bf16.mxu1 %v3840_v4 }
 0xdf3   : > { %v2593_v51 = vpop.f32.mrb[52].mxu1 }
 0xdf4   : > { %v2649_v52 = vpack.c.bf16 %v2593_v51, %v2593_v51  ;;  %v2545_v54 = vpop.f32.mrb[56].mxu0  ;;  %v3551_v55 = vpop.f32.mrb[53].mxu1  ;;  %v2937_v51 = vpack.c.bf16 %v1993_v50, %v1992_v49 }
 0xdf5   : > { %v2648_v56 = vpack.c.bf16 %v2545_v54, %v2545_v54  ;;  %v3545_v57 = vpop.f32.mrb[57].mxu0  ;;  %v2596_v58 = vpop.f32.mrb[54].mxu1  ;;  %v1995_v54 = vld [vmem:[%s4540_s27 + $0x38] sm:$0xff] }
 0xdf6   : > { %v2548_v62 = vpop.f32.mrb[58].mxu0  ;;  %v3552_v63 = vpop.f32.mrb[55].mxu1  ;;  %3574 = vmatmul.mubr.msk.bf16.vlgmr.msra.gmra.mrb[60].mxu1 %vm1145_vm3, %v2649_v52  ;;  %v1994_v52 = vld [vmem:[%s4540_s27 + $0x30] sm:$0xff]  ;;  %v1997_v57 = vld [vmem:[%s4540_s27 + $0x48] sm:$0xff] }
 0xdf7   : > { %v3546_v0 = vpop.f32.mrb[59].mxu0  ;;  %3568 = vmatmul.mubr.msk.bf16.vlgmr.msra.gmra.mrb[64].mxu0 %vm1145_vm3, %v2648_v56  ;;  %3587 = vmatprep.mubr.msk.bf16.mxu1 %vm3841_vm0, %v3840_v4  ;;  %v2938_v55 = vpack.c.bf16 %v1995_v54, %v1994_v52  ;;  %v1996_v56 = vld [vmem:[%s4540_s27 + $0x40] sm:$0xff]  ;;  %v1999_v62 = vld [vmem:[%s4540_s27 + $0x58] sm:$0xff] }
 0xdf8   : > { %3578 = vmatpush3.bf16.msra.mxu0 %v2797_v61  ;;  %3579 = vmatprep.mubr.msk.bf16.mxu0 %vm3841_vm0, %v3840_v4  ;;  %v2939_v58 = vpack.c.bf16 %v1997_v57, %v1996_v56  ;;  %v1998_v61 = vld [vmem:[%s4540_s27 + $0x50] sm:$0xff] }
 0xdf9   : > { %3591 = vmatprep.subr.bf16.mxu0 %v3840_v4  ;;  %3584 = vmatpush3.bf16.msra.mxu1 %v2882_v39  ;;  %v2940_v63 = vpack.c.bf16 %v1999_v62, %v1998_v61  ;;  %v3020_v39 = vld [vmem:[%s3988_s23 + $0x10] sm:$0xff] }
 0xdfa   : > { %3585 = vmatprep.subr.bf16.mxu1 %v3840_v4 }
 0xdfc   : > { %v2641_v1 = vpop.f32.mrb[60].mxu0 }
 0xdfd   : > { %v2650_v46 = vpack.c.bf16 %v2641_v1, %v2641_v1  ;;  %v3557_v59 = vpop.f32.mrb[61].mxu0 }
 0xdfe   : > { %v2644_v60 = vpop.f32.mrb[62].mxu0 }
 0xdff   : > { %v3558_v2 = vpop.f32.mrb[63].mxu0  ;;  %3580 = vmatmul.mubr.msk.bf16.vlgmr.msra.gmra.mrb[68].mxu0 %vm1145_vm3, %v2650_v46  ;;  %v3235_v60 = vld [vmem:[%s4541_s7] ss:$0 sm:$0xff]  ;;  %s3245_s7 = sshll.u32 %s4022_s18, 7  ;;  %s3844_s18 = smov [#allocation4]  }
 0xe00   : > { %3607 = vmatprep.mubr.msk.bf16.mxu0 %vm3841_vm0, %v3840_v4  ;;  %3592 = vmatpush3.bf16.msra.mxu0 %v2935_v44 }
 0xe01   : > { %3593 = vmatprep.subr.bf16.mxu0 %v3840_v4 }
 0xe04   : > { %3594 = vmatpush3.bf16.msra.mxu0 %v2936_v48  ;;  %v3241_v48 = vld [vmem:[%s4546_s12] ss:$0 sm:$0xff] }
 0xe05   : > { %3595 = vmatprep.subr.bf16.mxu0 %v3840_v4 }
 0xe08   : > { %3596 = vmatpush3.bf16.msra.mxu0 %v2937_v51 }
 0xe09   : > { %3597 = vmatprep.subr.bf16.mxu0 %v3840_v4 }
 0xe0c   : > { %3598 = vmatpush3.bf16.msra.mxu0 %v2938_v55 }
 0xe0d   : > { %3599 = vmatprep.subr.bf16.mxu0 %v3840_v4 }
 0xe10   : > { %3600 = vmatpush3.bf16.msra.mxu0 %v2939_v58 }
 0xe11   : > { %3601 = vmatprep.subr.bf16.mxu0 %v3840_v4 }
 0xe14   : > { %3602 = vmatpush3.bf16.msra.mxu0 %v2940_v63 }
 0xe15   : > { %3603 = vmatprep.subr.bf16.mxu0 %v3840_v4 }
 0xeb9   : > { %v2695_v3 = vpop.f32.mrb[56].mxu1 }
 0xeba   : > { %v3563_v5 = vpop.f32.mrb[57].mxu1  ;;  %v2839_v12 = vsel %vm974_vm2, %v2695_v3, 0.0  ;;  %v3236_v3 = vld [vmem:[%s4542_s3] ss:$0 sm:$0xff]  ;;  %s4545_s3 = sld [smem:[#allocation23_spill]] }
 0xebb   : > { %v2698_v6 = vpop.f32.mrb[58].mxu1 }
 0xebc   : > { %v3564_v7 = vpop.f32.mrb[59].mxu1 }
 0xec0   : > { %v3240_v44 = vld [vmem:[%s4545_s3] ss:$0 sm:$0xff]  ;;  %s4464_s3 = scalar_lea.hbm %s3998_s10, %s3245_s7 }
 0xec9   : > { %v2787_v9 = vpop.f32.mrb[60].mxu1 }
 0xeca   : > { %v2741_v10 = vpop.f32.mrb[64].mxu0  ;;  %v3575_v11 = vpop.f32.mrb[61].mxu1  ;;  %v2842_v15 = vsel %vm974_vm2, %v2787_v9, 0.0  ;;  %v2000_v9 = vld [vmem:[%s4540_s27 + $0x60] sm:$0xff] }
 0xecb   : > { %v2840_v13 = vsel %vm974_vm2, %v2741_v10, 0.0  ;;  %v3569_v14 = vpop.f32.mrb[65].mxu0  ;;  %v2790_v16 = vpop.f32.mrb[62].mxu1  ;;  %v2001_v10 = vld [vmem:[%s4540_s27 + $0x68] sm:$0xff] }
 0xecc   : > { %v2841_v17 = vadd.f32 %v2840_v13, %v2839_v12  ;;  %v2744_v18 = vpop.f32.mrb[66].mxu0  ;;  %v3576_v8 = vpop.f32.mrb[63].mxu1  ;;  %v2941_v11 = vpack.c.bf16 %v2001_v10, %v2000_v9  ;;  %v2002_v12 = vld [vmem:[%s4540_s27 + $0x70] sm:$0xff]  ;;  %v2003_v13 = vld [vmem:[%s4540_s27 + $0x78] sm:$0xff]  ;;  %v3237_v16 = vld [vmem:[%s4543_s4] ss:$0 sm:$0xff] }
 0xecd   : > { %v3570_v53 = vpop.f32.mrb[67].mxu0  ;;  %v2942_v14 = vpack.c.bf16 %v2003_v13, %v2002_v12 }
 0xece   : > { %v2843_v19 = vadd.f32 %v2842_v15, %v2841_v17  ;;  %3604 = vmatpush3.bf16.msra.mxu0 %v2941_v11 }
 0xecf   : > { %3605 = vmatprep.subr.bf16.mxu0 %v3840_v4 }
 0xed2   : > { %v2833_v22 = vpop.f32.mrb[68].mxu0  ;;  %3606 = vmatpush3.bf16.msra.mxu0 %v2942_v14 }
 0xed3   : > { %v2844_v23 = vsel %vm974_vm2, %v2833_v22, 0.0  ;;  %v3581_v24 = vpop.f32.mrb[69].mxu0 }
 0xed4   : > { %v2845_v25 = vadd.f32 %v2844_v23, %v2843_v19  ;;  %v2836_v26 = vpop.f32.mrb[70].mxu0 }
 0xed5   : > { %v3582_v27 = vpop.f32.mrb[71].mxu0 }
 0xed6   : > { %v2852_v28 = vadd.f32 %v3234_v20, %v2845_v25  ;;  %v3239_v20 = vld [vmem:[%s4544_s8] ss:$0 sm:$0xff]  ;;  %s871_s8 = sand.u32 1, %s3800_s0  }
 0xed7   : > { %s3183_s4 = sshll.u32 %s871_s8, 3 }
 0xed8   : > { %v2853_v29 = vadd.f32 %v2852_v28, %v4268_v34  ;;  %v1985_v34 = vld [vmem:[%s4539_s11 + $0x10] sm:$0xff]  ;;  %s873_s9 = scalar_lea.vmem [#allocation4], %s3183_s4  ;;  %s3748_s4 = sshll.u32 %s3844_s18, 4  ;;  %s3749_s4 = int_to_ptr.vmem [resolvable:$false] %s3748_s4 }
 0xed9   : > { %v2883_v41 = vpack.c.bf16 %v1986_v40, %v1985_v34  ;;  %v3021_v34 = vld [vmem:[%s3988_s23 + $0x18] sm:$0xff]  ;;  %s3091_s11 = sshll.u32 %s873_s9, 4  ;;  %s3750_s13 = scalar_lea.vmem %s3749_s4, 256  ;;  %s4466_s11 = int_to_ptr.vmem [resolvable:$true] %s3091_s11 }
 0xeda   : > { %v2854_v30 = vsel %vm974_vm2, %v2853_v29, 0.0  ;;  %v3025_v40 = vpack.c.bf16 %v3021_v34, %v3020_v39  ;;  %s3744_s12 = scalar_lea.vmem %s4466_s11, 128  ;;  %p3751_p5 = scmp.lt.s32.totalorder %s4466_s11, %s3749_s4 }
 0xedb   : > { %2855 = vadd.xlane.f32.xlu0 %v2854_v30  ;;  %3586 = vmatpush3.bf16.msra.mxu1 %v2883_v41  ;;  %p3745_p2 = scmp.ne.s32.totalorder %s4466_s11, %s3744_s12  ;;  %p3752_p6 = scmp.lt.s32.totalorder %s3750_s13, %s3744_s12 }
 0xedc   : > { %3611 = vmatprep.subr.bf16.mxu1 %v3840_v4 }
 0xedd   : > { %p3746_p3 = pnand %p3745_p2, %p4039_p10  ;;  %p3753_p7 = por %p3752_p6, %p3751_p5 }
 0xedf   : > { %p3747_p4 = pneg %p3746_p3 }
 0xee1   : > { %p3754_p8 = pnand %p3753_p7, %p3747_p4 }
 0xf68   : > { %v2856_v31 = vpop.xlane.xlu0 %2855 }
 0xf69   : > { %v2857_v32 = vmul.f32 0.03125, %v2856_v31 }
 0xf6b   : > { %v2858_v33 = vsub.f32 %v2853_v29, %v2857_v32 }
 0xf6d   : > { %v2859_v35 = vmul.f32 %v2858_v33, %v2858_v33 }
 0xf6f   : > { %v2860_v36 = vsel %vm974_vm2, %v2859_v35, 0.0 }
 0xf70   : > { %2861 = vadd.xlane.f32.xlu1 %v2860_v36  ;;  %v3018_v36 = vld [vmem:[%s3988_s23] sm:$0xff] }
 0xf71   : > { %v3024_v38 = vpack.c.bf16 %v3019_v37, %v3018_v36 }
 0xffd   : > { %v2862_v0 = vpop.xlane.xlu1 %2861 }
 0xffe   : > { %v2863_v1 = vmul.f32 0.03125, %v2862_v0 }
0x1000   : > { %v2864_v46 = vadd.f32 1e-05, %v2863_v1 }
0x1002   : > { %3728 = vrsqrt.f32 %v2864_v46 }
0x100c   : > { %v3729_v59 = vpop.eup %3728 }
0x100d   : > { %v2866_v2 = vmul.f32 %v3729_v59, %v2858_v33 }
0x100f   : > { %v2873_v5 = vmul.f32 %v3235_v60, %v2866_v2 }
0x1011   : > { %v2880_v6 = vadd.f32 %v3236_v3, %v2873_v5 }
0x1013   : > { %v2881_v7 = vpack.c.bf16 %v2880_v6, %v2880_v6 }
0x1015   : > { %3588 = vmatmul.mubr.msk.bf16.vlgmr.msra.gmra.mrb[64].mxu1 %vm974_vm2, %v2881_v7 }
0x1016   : > { %3615 = vmatprep.mubr.msk.bf16.mxu1 %vm3841_vm0, %v3840_v4  ;;  %3612 = vmatpush3.bf16.msra.mxu1 %v3024_v38 }
0x1017   : > { %3613 = vmatprep.subr.bf16.mxu1 %v3840_v4  ;;  %v3242_v4 = vld [vmem:[%s4547_s1] ss:$0 sm:$0xff]  ;;  %s3078_s1 = scalar_lea.sflag [#allocation5], %s871_s8 }
0x101a   : > { %3614 = vmatpush3.bf16.msra.mxu1 %v3025_v40 }
0x10e8   : > { %v2927_v17 = vpop.f32.mrb[64].mxu1 }
0x10e9   : > { %v2928_v18 = vadd.f32 %v3237_v16, %v2927_v17  ;;  %v3589_v8 = vpop.f32.mrb[65].mxu1 }
0x10ea   : > { %v2930_v15 = vpop.f32.mrb[66].mxu1 }
0x10eb   : > { %v2933_v53 = vmax.f32 %v2928_v18, 0.0  ;;  %v3590_v19 = vpop.f32.mrb[67].mxu1 }
0x10ed   : > { %v2934_v22 = vpack.c.bf16 %v2933_v53, %v2933_v53 }
0x10ef   : > { %3608 = vmatmul.mubr.bf16.vlgmr.msra.gmra.mrb[72].mxu0 %v2934_v22 }
0x11c2   : > { %v2983_v23 = vpop.f32.mrb[72].mxu0 }
0x11c3   : > { %v2984_v24 = vadd.f32 %v3239_v20, %v2983_v23  ;;  %v3609_v25 = vpop.f32.mrb[73].mxu0 }
0x11c4   : > { %v2986_v26 = vpop.f32.mrb[74].mxu0 }
0x11c5   : > { %v3610_v27 = vpop.f32.mrb[75].mxu0  ;;  %v2989_v28 = vadd.f32 %v2984_v24, %v2880_v6 }
0x11c7   : > { %v2990_v29 = vsel %vm974_vm2, %v2989_v28, 0.0 }
0x11c8   : > { %2991 = vadd.xlane.f32.xlu0 %v2990_v29 }
0x1255   : > { %v2992_v30 = vpop.xlane.xlu0 %2991 }
0x1256   : > { %v2993_v31 = vmul.f32 0.03125, %v2992_v30 }
0x1258   : > { %v2994_v32 = vsub.f32 %v2989_v28, %v2993_v31 }
0x125a   : > { %v2995_v33 = vmul.f32 %v2994_v32, %v2994_v32 }
0x125c   : > { %v2996_v35 = vsel %vm974_vm2, %v2995_v33, 0.0 }
0x125d   : > { %2997 = vadd.xlane.f32.xlu0 %v2996_v35 }
0x12ea   : > { %v2998_v41 = vpop.xlane.xlu0 %2997 }
0x12eb   : > { %v2999_v42 = vmul.f32 0.03125, %v2998_v41 }
0x12ed   : > { %v3000_v43 = vadd.f32 1e-05, %v2999_v42 }
0x12ef   : > { %3730 = vrsqrt.f32 %v3000_v43 }
0x12f9   : > { %v3731_v45 = vpop.eup %3730 }
0x12fa   : > { %v3002_v47 = vmul.f32 %v3731_v45, %v2994_v32 }
0x12fc   : > { %v3009_v49 = vmul.f32 %v3240_v44, %v3002_v47 }
0x12fe   : > { %v3016_v50 = vadd.f32 %v3241_v48, %v3009_v49 }
0x1300   : > { %v3017_v51 = vmul.f32 %v4074_v21, %v3016_v50 }
0x1302   : > { %v3023_v52 = vpack.c.bf16 %v3017_v51, %v3017_v51 }
0x1304   : > { %3616 = vmatmul.mubr.msk.bf16.vlgmr.msra.gmra.mrb[68].mxu1 %vm974_vm2, %v3023_v52 }
0x13d7   : > { %v3069_v54 = vpop.f32.mrb[68].mxu1 }
0x13d8   : > { %v3070_v55 = vadd.f32 %v3242_v4, %v3069_v54  ;;  %v3617_v56 = vpop.f32.mrb[69].mxu1 }
0x13d9   : > { %v3072_v57 = vpop.f32.mrb[70].mxu1 }
0x13da   : > { %v3075_v58 = vmul.f32 %v4074_v21, %v3070_v55  ;;  %v3618_v61 = vpop.f32.mrb[71].mxu1 }
0x13dc   : > { %3076 = vst.msk [vmem:[%s873_s9] sm:$0xff] %vm974_vm2, %v3075_v58 }
0x13dd   : > { %3757 = shalt.err (!%p3754_p8)
}
0x13de   : > { %s3758_s9 = scalar_lea.hbm %s4464_s3, 128  ;;  %s3762_s8 = scalar_lea.hbm %s3998_s10, 256 }
0x13df   : > { %p3759_p9 = scmp.ne.s32.totalorder %s4464_s3, %s3758_s9  ;;  %p3763_p0 = scmp.lt.u32.totalorder %s4464_s3, %s3998_s10 }
0x13e0   : > { %p3764_p1 = scmp.lt.u32.totalorder %s3762_s8, %s3758_s9  ;;  %p3766_p3 = scmp.lt.u32.totalorder %s3758_s9, %s4464_s3 }
0x13e1   : > { %p3760_p12 = pnand %p3759_p9, %p4039_p10 }
0x13e2   : > { %p3765_p2 = por %p3764_p1, %p3763_p0 }
0x13e3   : > { %p3761_p13 = pneg %p3760_p12 }
0x13e4   : > { %p3767_p5 = por %p3766_p3, %p3765_p2 }
0x13e6   : > { %p3768_p4 = pnand %p3767_p5, %p3761_p13 }
0x13e8   : > { %3771 = shalt.err (!%p3768_p4)
}
0x13e9   : > { %3619 = dma.vmem_to_hbm [thread:$0]  (%p4039_p10), %s4466_s11, 128, %s4464_s3, %s3078_s1  }
0x13ea PF: > { %p3625_p6 = scmp.ge.s32.totalorder %s3808_s15, 2  ;;  %s3103_s13 = sand.u32 1, %s3796_s6  }
0x13eb   : > { %s3104_s12 = scalar_lea.sflag [#allocation5], %s3103_s13 }
0x13ec   : > { %p3622_p7 = pnand %p3625_p6, %p4043_p11 }
0x13ee   : > { %3791 = dma.done.wait (!%p3622_p7), %s3104_s12, 128  }
0x13ef   : > { %3793 = vsyncadd (!%p3622_p7), %s3104_s12, 4294967168  ;;  %p75_p8 = scmp.ge.s32.totalorder %s4026_s22, 4   ;;  %s4548_s6 = smov %s3800_s0 }
0x13f0   : > { %s4549_s0 = smov %s3804_s5  ;;  %s4550_s5 = smov %s4037_s28 }
0x13f1   : > { %s4551_s15 = smov %s4026_s22  ;;  %77 = sbr.rel (!%p75_p8) target bundleno = 61 (0x3d), region = 196 }
0x13f8   :  { %3109 = vsyncpa [#allocation5], 1 }
0x13f9   :  { %3111 = vsyncpa [#allocation5 + $0x1], 1 }

</bundles_post_ra>
